<compile_context>
chip_gen: v6e
topology: v6e:2x2x1
jax: 0.10.0
libtpu: 0.0.40
codegen_flags: <defaults>
</compile_context>

<pallas_src>
import jax
import jax.numpy as jnp
from jax.experimental import pallas as pl
from jax.experimental.pallas import tpu as pltpu


def _cdiv(a, b):
    return -(-a // b)


def _round_up(a, m):
    return _cdiv(a, m) * m


def _vmem_capacity_bytes():
    """Physical VMEM per TensorCore; conservative fallback = v7x (64 MiB)."""
    try:
        info = pltpu.get_tpu_info()
        for attr in ("vmem_capacity_bytes", "vmem_size_bytes", "vmem_bytes"):
            v = getattr(info, attr, None)
            if v:
                return int(v)
    except Exception:
        pass
    return 64 * 1024 * 1024


def _select_tiles(B, K, Np, x_bytes, w_bytes, out_bytes, cd_bytes, vmem_budget):
    # ---- batch tile: round to 16 (bf16 sublane packing), minimize padding.
    tm_max = 512 if K <= 1024 else 256
    tm_cap = min(tm_max, _round_up(B, 16))
    nb = _cdiv(B, tm_cap)
    tm = _round_up(_cdiv(B, nb), 16)           # e.g. B=300 -> tm=304 (pad 4)

    # ---- feature tile: largest lane-dense divisor of Np that fits VMEM,
    # preferring >= 2 tiles so the "parallel" feature axis spans both v7x TCs.
    def fits(tn):
        need = (2 * (tm * K * x_bytes            # x tile (double-buffered)
                     + tn * K * w_bytes          # W tile (double-buffered)
                     + tn * 4                    # bias tile
                     + tm * tn * out_bytes)      # output tile
                + K * tn * cd_bytes)             # transposed-weight scratch
        return need <= vmem_budget

    candidates = [c for c in (4096, 2048, 1024, 512, 256, 128)
                  if c <= Np and Np % c == 0 and fits(c)]
    tn = None
    for c in candidates:
        if Np // c >= 2:
            tn = c
            break
    if tn is None:
        tn = candidates[0] if candidates else 128
    return tm, tn


def _encoder_kernel(x_ref, w_ref, b_ref, o_ref, wT_ref):
    # x_ref : (tm, K)   batch tile, compute dtype (bf16)
    # w_ref : (tn, K)   W_e tile, native PyTorch layout / dtype
    # b_ref : (1, tn)   b_e tile, f32
    # o_ref : (tm, tn)  output tile
    # wT_ref: (K, tn)   persistent VMEM scratch holding the transposed tile
    #
    # The weight tile is resident across the whole inner (batch) axis, so
    # cast + transpose it exactly once per feature tile; every batch step
    # after that is a plain A@B on the MXU.
    @pl.when(pl.program_id(1) == 0)
    def _():
        wT_ref[...] = jnp.transpose(
            w_ref[...].astype(jnp.float32), (1, 0)).astype(wT_ref.dtype)

    y = jnp.dot(x_ref[...], wT_ref[...], preferred_element_type=jnp.float32)
    y = y + b_ref[...]                                     # f32 epilogue
    o_ref[...] = jnp.maximum(y, 0.0).astype(o_ref.dtype)   # ReLU, cast@store


def encoder_forward(x, W_e, b_d, b_e, *, compute_dtype=jnp.bfloat16,
                    out_dtype=None):
    """Pallas forward pass of _Encoder.

    x:   [B, K]   activations
    W_e: [N, K]   encoder weight in PyTorch nn.Linear layout (any dtype;
                  pass a persisted bf16 copy for the fast path)
    b_d: [K]      shared decoder bias
    b_e: [N]      encoder bias
    returns: [B, N] in `out_dtype` (default: x.dtype)
    """
    B, K = x.shape
    N, K2 = W_e.shape
    assert K == K2, "W_e must be [n_features, n_activations]"
    if out_dtype is None:
        out_dtype = x.dtype

    # Fold b_d into x in f32 (cheap: B*K elements), then cast once to the
    # matmul compute dtype.  (x - b_d) @ W_e.T + b_e == relu input.
    x_c = (x.astype(jnp.float32) - b_d.astype(jnp.float32)).astype(compute_dtype)
    b_f = b_e.astype(jnp.float32).reshape(1, N)

    # Pad ragged feature counts to a lane multiple (rare; zero-padded weights
    # + bias produce relu(0)=0 in the tail, sliced off below).
    Np = _round_up(N, 128)
    W_in = W_e
    if Np != N:
        W_in = jnp.pad(W_in, ((0, Np - N), (0, 0)))
        b_f = jnp.pad(b_f, ((0, 0), (0, Np - N)))

    # Generation-aware VMEM budget (~75% of physical: 48 MiB on v7x,
    # ~96 MiB on v5e/v6e) used both for tile selection and the scoped limit.
    vmem_budget = int(0.75 * _vmem_capacity_bytes())
    tm, tn = _select_tiles(
        B, K, Np,
        x_bytes=jnp.dtype(compute_dtype).itemsize,
        w_bytes=jnp.dtype(W_in.dtype).itemsize,
        out_bytes=jnp.dtype(out_dtype).itemsize,
        cd_bytes=jnp.dtype(compute_dtype).itemsize,
        vmem_budget=vmem_budget)

    Bp = _round_up(B, tm)
    if Bp != B:
        x_c = jnp.pad(x_c, ((0, Bp - B), (0, 0)))

    # Feature tiles OUTER (parallel -> split across v7x TCs, each streams
    # half the weights), batch tiles INNER (arbitrary/sequential -> the
    # weight tile & its transposed scratch stay resident across the axis).
    grid = (Np // tn, Bp // tm)

    out = pl.pallas_call(
        _encoder_kernel,
        out_shape=jax.ShapeDtypeStruct((Bp, Np), out_dtype),
        grid_spec=pltpu.PrefetchScalarGridSpec(
            num_scalar_prefetch=0,
            grid=grid,
            in_specs=[
                pl.BlockSpec((tm, K), lambda j, i: (i, 0)),   # x batch tile
                pl.BlockSpec((tn, K), lambda j, i: (j, 0)),   # W_e feat tile
                pl.BlockSpec((1, tn), lambda j, i: (0, j)),   # b_e feat tile
            ],
            out_specs=pl.BlockSpec((tm, tn), lambda j, i: (i, j)),
            scratch_shapes=[pltpu.VMEM((K, tn), compute_dtype)],
        ),
        compiler_params=pltpu.CompilerParams(
            dimension_semantics=("parallel", "arbitrary"),
            vmem_limit_bytes=vmem_budget,
        ),
    )(x_c, W_in, b_f)

    if Bp != B or Np != N:
        out = out[:B, :N]
    return out


def encoder_ref(x, W_e, b_d, b_e):
    """Pure-JAX f32 reference matching the PyTorch forward exactly."""
    y = (x - b_d) @ W_e.T + b_e
    return jnp.maximum(y, 0.0)


if __name__ == "__main__":
    # Small shapes that exercise both grid axes and the batch-padding path.
    B = 300                # not a multiple of 16 -> padded to tm=304
    n_activations = 128    # K
    n_features = 1024      # N -> 2 feature tiles at tn=512 (both TCs busy)

    key = jax.random.PRNGKey(0)
    k_x, k_w, k_bd = jax.random.split(key, 3)

    x = jax.random.normal(k_x, (B, n_activations), dtype=jnp.float32)
    bound = 1.0 / jnp.sqrt(n_activations)
    W_e = jax.random.uniform(k_w, (n_features, n_activations),
                             minval=-bound, maxval=bound, dtype=jnp.float32)
    b_d = 0.1 * jax.random.normal(k_bd, (n_activations,), dtype=jnp.float32)
    b_e = jnp.zeros((n_features,), dtype=jnp.float32)

    ref = encoder_ref(x, W_e, b_d, b_e)

    # Fast path: weights persisted in bf16 once (no per-call cast pass).
    W_e_bf16 = W_e.astype(jnp.bfloat16)
    out = jax.block_until_ready(encoder_forward(x, W_e_bf16, b_d, b_e))
    assert out.shape == (B, n_features) and out.dtype == x.dtype
    assert jnp.allclose(out, ref, atol=5e-2, rtol=5e-2), "mismatch (bf16 W)"

    # Also exercise f32-weight streaming (in-kernel cast) + bf16 output store.
    out_bf16 = jax.block_until_ready(
        encoder_forward(x, W_e, b_d, b_e, out_dtype=jnp.bfloat16))
    assert out_bf16.shape == (B, n_features) and out_bf16.dtype == jnp.bfloat16
    assert jnp.allclose(out_bf16.astype(jnp.float32), ref,
                        atol=7e-2, rtol=7e-2), "mismatch (f32 W, bf16 out)"

    print("KERNEL_OK")
</pallas_src>

<mosaic_0001>
module attributes {stable_mosaic.version = 11 : i64} {
  func.func @_encoder_kernel(%arg0: i32, %arg1: i32, %arg2: memref<304x128xbf16, #tpu.memory_space<vmem>>, %arg3: memref<512x128xbf16, #tpu.memory_space<vmem>>, %arg4: memref<1x512xf32, #tpu.memory_space<vmem>>, %arg5: memref<304x512xf32, #tpu.memory_space<vmem>>, %arg6: memref<128x512xbf16, #tpu.memory_space<vmem>>) attributes {dimension_semantics = [#tpu.dimension_semantics<parallel>, #tpu.dimension_semantics<arbitrary>], iteration_bounds = array<i64: 2, 1>, scalar_prefetch = 0 : i64, scratch_operands = 1 : i64, tpu.core_type = #tpu.core_type<tc>, window_params = [{transform_indices = @transform_0, window_bounds = array<i64: 304, 128>}, {transform_indices = @transform_1, window_bounds = array<i64: 512, 128>}, {transform_indices = @transform_2, window_bounds = array<i64: 1, 512>}, {transform_indices = @transform_3, window_bounds = array<i64: 304, 512>}]} {
    %c0_i32 = arith.constant 0 : i32
    %0 = arith.cmpi eq, %arg1, %c0_i32 : i32
    %1 = arith.extui %0 : i1 to i32
    %c0_i32_0 = arith.constant 0 : i32
    %2 = arith.cmpi ne, %1, %c0_i32_0 : i32
    scf.if %2 {
      %c0_9 = arith.constant 0 : index
      %c0_10 = arith.constant 0 : index
      %12 = vector.load %arg3[%c0_9, %c0_10] : memref<512x128xbf16, #tpu.memory_space<vmem>>, vector<512x128xbf16>
      %13 = arith.extf %12 : vector<512x128xbf16> to vector<512x128xf32>
      %14 = tpu.transpose %13, [1, 0] : vector<512x128xf32> -> vector<128x512xf32>
      %15 = arith.truncf %14 : vector<128x512xf32> to vector<128x512xbf16>
      %c0_11 = arith.constant 0 : index
      %c0_12 = arith.constant 0 : index
      %16 = vector.load %arg6[%c0_11, %c0_12] : memref<128x512xbf16, #tpu.memory_space<vmem>>, vector<128x512xbf16>
      tpu.vector_store %arg6[%c0_11, %c0_12], %15 {strides = array<i32>} : memref<128x512xbf16, #tpu.memory_space<vmem>>, vector<128x512xbf16>,
    } else {
    }
    %c0 = arith.constant 0 : index
    %c0_1 = arith.constant 0 : index
    %3 = vector.load %arg2[%c0, %c0_1] : memref<304x128xbf16, #tpu.memory_space<vmem>>, vector<304x128xbf16>
    %c0_2 = arith.constant 0 : index
    %c0_3 = arith.constant 0 : index
    %4 = vector.load %arg6[%c0_2, %c0_3] : memref<128x512xbf16, #tpu.memory_space<vmem>>, vector<128x512xbf16>
    %cst = arith.constant dense<0.000000e+00> : vector<304x512xf32>
    %5 = tpu.matmul %3, %4, %cst {dimension_numbers = #tpu.dot_dimension_numbers<[1], [0], [0], [1], [0, 0, 1, 1], [], []>} : vector<304x128xbf16>, vector<128x512xbf16>, vector<304x512xf32> -> vector<304x512xf32>
    %c0_4 = arith.constant 0 : index
    %c0_5 = arith.constant 0 : index
    %6 = vector.load %arg4[%c0_4, %c0_5] : memref<1x512xf32, #tpu.memory_space<vmem>>, vector<1x512xf32>
    %7 = vector.broadcast %6 : vector<1x512xf32> to vector<304x512xf32>
    %8 = arith.addf %5, %7 : vector<304x512xf32>
    %cst_6 = arith.constant 0.000000e+00 : f32
    %9 = vector.broadcast %cst_6 : f32 to vector<304x512xf32>
    %10 = arith.maximumf %8, %9 : vector<304x512xf32>
    %c0_7 = arith.constant 0 : index
    %c0_8 = arith.constant 0 : index
    %11 = vector.load %arg5[%c0_7, %c0_8] : memref<304x512xf32, #tpu.memory_space<vmem>>, vector<304x512xf32>
    tpu.vector_store %arg5[%c0_7, %c0_8], %10 {strides = array<i32>} : memref<304x512xf32, #tpu.memory_space<vmem>>, vector<304x512xf32>,
    return
  }
  func.func @transform_0(%arg0: i32, %arg1: i32) -> (i32, i32) {
    %c0_i32 = arith.constant 0 : i32
    %c0_i32_0 = arith.constant 0 : i32
    return %arg1, %c0_i32 : i32, i32
  }
  func.func @transform_1(%arg0: i32, %arg1: i32) -> (i32, i32) {
    %c0_i32 = arith.constant 0 : i32
    %c0_i32_0 = arith.constant 0 : i32
    return %arg0, %c0_i32 : i32, i32
  }
  func.func @transform_2(%arg0: i32, %arg1: i32) -> (i32, i32) {
    %c0_i32 = arith.constant 0 : i32
    %c0_i32_0 = arith.constant 0 : i32
    return %c0_i32, %arg0 : i32, i32
  }
  func.func @transform_3(%arg0: i32, %arg1: i32) -> (i32, i32) {
    %c0_i32 = arith.constant 0 : i32
    return %arg1, %arg0 : i32, i32
  }
}

</mosaic_0001>

<bundles_post_ra>
// kernel: tpu_custom_call.1
= control target key start
LH: loop header
LB: loop body
LE: loop exit
PB: predicated region body
PF: predicated region fallthrough
CT: control target
= control target key end

     0   :  { %8 = vsyncpa [#allocation4], 0  ;;  %s3521_s0 = inlined_call_operand.hbm [shape: bf16[304,128], index: 0, kind: input, shape index: {}]   ;;  %s3522_s1 = inlined_call_operand.hbm [shape: bf16[1024,128], index: 1, kind: input, shape index: {}]   ;;  %s3523_s2 = inlined_call_operand.hbm [shape: f32[1,1024], index: 2, kind: input, shape index: {}]   ;;  %s3524_s3 = inlined_call_operand.hbm [shape: f32[304,1024], index: 3, kind: output, shape index: {}]  }
   0x1   :  { %9 = vsyncpa [#allocation7], 0 }
   0x2   :  { %11 = vsyncpa [#allocation7 + $0x1], 0 }
   0x3   :  { %12 = vsyncpa [#allocation5], 0 }
   0x4   :  { %14 = vsyncpa [#allocation5 + $0x1], 0  ;;  %s2856_s12 = smov 0   ;;  %s2858_s13 = smov 0  }
   0x5   :  { %s2860_s14 = smov 0   ;;  %s2862_s15 = smov 0  }
   0x6   :  { %s2864_s16 = smov 0   ;;  %s2866_s17 = smov 0  }
   0x7 LB: > { %s32_s18 = sadd.s32 1, %s2820_s16  ;;  %s65_s19 = sadd.s32 1, %s2812_s14  ;;  %s2824_s17 = sphi %s2866_s17, %s20_s17   ;;  %s2820_s16 = sphi %s2864_s16, %s3548_s16   ;;  %s2816_s15 = sphi %s2862_s15, %s3547_s15   ;;  %s2812_s14 = sphi %s2860_s14, %s3546_s14   ;;  %s2808_s13 = sphi %s2858_s13, %s3545_s13   ;;  %s2804_s12 = sphi %s2856_s12, %s3544_s12  }
   0x8   : > { %p34_p0 = scmp.ge.s32.totalorder %s32_s18, 2  ;;  %p72_p1 = scmp.ne.s32.totalorder %s2812_s14, %s2808_s13 }
   0x9   : > { %p73_p2 = scmp.eq.s32.totalorder %s2824_s17, 0  ;;  %p2357_p6 = scmp.lt.s32.totalorder %s2824_s17, 2 }
   0xa   : > { %s3550_s18 = smov (%p34_p0, %s32_s18), 0  ;;  %s172_s22 = sand.u32 1, %s2824_s17  }
   0xb   : > { %p2896_p3 = por %p73_p2, %p72_p1  ;;  %s62_s21 = ssub.s32 %s2820_s16, %s3550_s18 }
   0xc   : > { %p63_p5 = scmp.eq.s32.totalorder %s62_s21, 0  ;;  %s174_s23 = sand.u32 1, %s2812_s14  }
   0xd   : > { %s2007_s25 = sshll.u32 %s174_s23, 8  ;;  %s2104_s26 = sshll.u32 %s2820_s16, 12 }
   0xe   : > { %s2907_s24 = scalar_select %p63_p5, %s2812_s14, %s65_s19  }
   0xf   : > { %s182_s29 = scalar_lea.hbm %s3522_s1, %s2104_s26  ;;  %s176_s30 = scalar_lea.vmem [#allocation6], %s2007_s25 }
  0x10   : > { %s183_s4 = sshll.u32 %s176_s30, 4  ;;  %p2917_p7 = pnand %p2357_p6, %p2896_p3  ;;  %s184_s4 = int_to_ptr.vmem [resolvable:$true] %s183_s4 }
  0x11   : > { %s2921_s6 = scalar_lea.sflag [#allocation7], %s172_s22  ;;  %s2671_s7 = scalar_lea.vmem %s184_s4, 4096 }
  0x12   : > { %p3526_p8 = pneg %p2917_p7  ;;  %p2672_p9 = scmp.ne.s32.totalorder %s184_s4, %s2671_s7 }
  0x13   : > { %s2826_s8 = smov [#allocation6]  }
  0x14   : > { %p2674_p10 = pnand %p2672_p9, %p3526_p8  ;;  %s2676_s9 = sshll.u32 %s2826_s8, 4  ;;  %s2677_s9 = int_to_ptr.vmem [resolvable:$false] %s2676_s9 }
  0x15   : > { %s2678_s10 = scalar_lea.vmem %s2677_s9, 8192  ;;  %p2679_p12 = scmp.lt.s32.totalorder %s184_s4, %s2677_s9 }
  0x16   : > { %p2675_p11 = pneg %p2674_p10  ;;  %p2680_p13 = scmp.lt.s32.totalorder %s2678_s10, %s2671_s7 }
  0x18   : > { %p2681_p0 = por %p2680_p13, %p2679_p12 }
  0x1a   : > { %p2682_p2 = pnand %p2681_p0, %p2675_p11 }
  0x1c   : > { %2685 = shalt.err (!%p2682_p2)
}
  0x1d   : > { %s3525_s11 = smov 64   ;;  %s2828_s19 = smov 4  }
  0x1e   : > { %2348 = dma.hbm_to_vmem [thread:$0]  (!%p2917_p7), %s182_s29, 4096, %s184_s4, %s2921_s6, %s3525_s11, %s3525_s11, %s2828_s19  }
  0x1f   : > { %s2935_s20 = sadd.s32 4294967295, %s2824_s17   ;;  %s2003_s21 = sadd.s32 4294967294, %s2824_s17  }
  0x20   : > { %p78_p3 = scmp.ne.s32.totalorder %s2808_s13, %s2804_s12  ;;  %p3528_p5 = scmp.eq.s32.totalorder %s2935_s20, 0 }
  0x21   : > { %p130_p6 = scmp.eq.s32.totalorder %s2935_s20, 1  ;;  %p136_p9 = scmp.eq.s32.totalorder %s2003_s21, 1 }
  0x22   : > { %p2004_p10 = scmp.ge.s32.totalorder %s2824_s17, 1  ;;  %p2945_p11 = por %p3528_p5, %p78_p3 }
  0x23   : > { %p2952_p12 = por %p130_p6, %p72_p1  ;;  %p2956_p13 = por %p136_p9, %p78_p3 }
  0x24   : > { %s3532_s22 = scalar_select %p2945_p11, 1, 0 }
  0x25   : > { %s3533_s25 = scalar_select %p2952_p12, 1, 0 }
  0x26   : > { %s3534_s26 = scalar_select %p2956_p13, 1, 0 }
  0x27   : > { %p143_p0 = scmp.lt.s32.totalorder %s2824_s17, 3  ;;  %s2829_s28 = smov [#allocation3]  }
  0x28   : > { %s158_s29 = sshll.u32 %s2829_s28, 4  ;;  %s2010_s30 = sshll.u32 %s174_s23, 2  ;;  %s159_s29 = int_to_ptr.vmem [resolvable:$true] %s158_s29 }
  0x29   : > { %p2961_p2 = pnand %p2004_p10, %p143_p0  ;;  %s2105_s4 = sshll.u32 %s2820_s16, 6 }
  0x2a   : > { %s197_s7 = scalar_lea.vmem [#allocation8], %s2010_s30  ;;  %s203_s21 = scalar_lea.hbm %s3523_s2, %s2105_s4 }
  0x2b   : > { %p2341_p4 = pneg %p2961_p2  ;;  %s205_s8 = sshll.u32 %s197_s7, 4  ;;  %s206_s8 = int_to_ptr.vmem [resolvable:$true] %s205_s8 }
  0x2c   : > { %s2697_s11 = scalar_lea.vmem %s159_s29, 2432  ;;  %p2705_p0 = scmp.lt.s32.totalorder %s159_s29, %s159_s29 }
  0x2d   : > { %p2342_p1 = pnand %p2341_p4, %p3528_p5  ;;  %p2698_p6 = scmp.ne.s32.totalorder %s159_s29, %s2697_s11 }
  0x2e   : > { %p2706_p8 = scmp.lt.s32.totalorder %s2697_s11, %s2697_s11 }
  0x2f   : > { %p2688_p3 = pneg %p2342_p1 }
  0x30   : > { %p2707_p13 = por %p2706_p8, %p2705_p0 }
  0x31   : > { %p2700_p9 = pnand %p2698_p6, %p2688_p3 }
  0x33   : > { %p2701_p10 = pneg %p2700_p9 }
  0x35   : > { %p2708_p12 = pnand %p2707_p13, %p2701_p10 }
  0x37   : > { %2711 = shalt.err (!%p2708_p12)
}
  0x38   : > { %s3536_s23 = smov 64   ;;  %s2725_s4 = scalar_lea.vmem %s206_s8, 64 }
  0x39   : > { %2344 = dma.hbm_to_vmem [thread:$0]  (!%p2342_p1), %s3521_s0, 2432, %s159_s29, [#allocation4], %s3536_s23, %s3536_s23, %s2828_s19  }
  0x3a   : > { %p2726_p4 = scmp.ne.s32.totalorder %s206_s8, %s2725_s4  ;;  %p3537_p5 = pneg %p2917_p7 }
  0x3b   : > { %s2830_s7 = smov [#allocation8]  }
  0x3c   : > { %p2728_p11 = pnand %p2726_p4, %p3537_p5  ;;  %s2730_s9 = sshll.u32 %s2830_s7, 4  ;;  %s2731_s9 = int_to_ptr.vmem [resolvable:$false] %s2730_s9 }
  0x3d   : > { %s2732_s11 = scalar_lea.vmem %s2731_s9, 128  ;;  %p2733_p8 = scmp.lt.s32.totalorder %s206_s8, %s2731_s9 }
  0x3e   : > { %p2729_p3 = pneg %p2728_p11  ;;  %p2734_p12 = scmp.lt.s32.totalorder %s2732_s11, %s2725_s4 }
  0x40   : > { %p2735_p13 = por %p2734_p12, %p2733_p8 }
  0x42   : > { %p2736_p6 = pnand %p2735_p13, %p2729_p3 }
  0x44   : > { %2739 = shalt.err (!%p2736_p6)
}
  0x45   : > { %2351 = dma.hbm_to_vmem [thread:$0]  (!%p2917_p7), %s203_s21, 64, %s206_s8, %s2921_s6  }
  0x46   : > { %214 = sbr.rel (%p2961_p2) target bundleno = 671 (0x29f), region = 32  ;;  %p3538_p1 = scmp.eq.s32.totalorder (!%p2961_p2), %s2935_s20, 0 }
  0x4b   : > { %2791 = dma.done.wait (%p3538_p1), [#allocation4], 2432   ;;  %p3539_p5 = pmov %p3538_p1 }
  0x4c   : > { %s220_s19 = sand.u32 1, %s2935_s20   ;;  %s2995_s29 = sand.u32 1, %s2808_s13  }
  0x4d   : > { %2793 = vsyncadd (%p3539_p5), [#allocation4], 4294964864  ;;  %s2015_s10 = sshll.u32 %s2995_s29, 8  ;;  %s221_s5 = scalar_lea.sflag [#allocation7], %s220_s19 }
  0x4e   : > { %s2998_s23 = scalar_lea.vmem [#allocation6], %s2015_s10  ;;  %p3540_p7 = scmp.ne.s32.totalorder %s3532_s22, 0 }
  0x50   : > { %2795 = dma.done.wait (%p3540_p7), %s221_s5, 4160  }
  0x51   : > { %2797 = vsyncadd (%p3540_p7), %s221_s5, 4294963136  ;;  %v2274_v0 = vld [vmem:[%s2998_s23 + $0x40] sm:$0xff]   ;;  %v2275_v12 = vld [vmem:[%s2998_s23 + $0x48] sm:$0xff]   ;;  %s2016_s6 = sshll.u32 %s2995_s29, 2  ;;  %s2330_s22 = smul.u32 1216, %s2995_s29 }
  0x52   : > { %v2290_v1 = vld [vmem:[%s2998_s23 + $0xc0] sm:$0xff]   ;;  %v2173_v3 = vunpack.c.l.bf16 %v2274_v0  ;;  %v2174_v7 = vunpack.c.h.bf16 %v2274_v0  ;;  %v2291_v13 = vld [vmem:[%s2998_s23 + $0xc8] sm:$0xff]   ;;  %v2177_v19 = vunpack.c.l.bf16 %v2275_v12  ;;  %v2178_v25 = vunpack.c.h.bf16 %v2275_v12  ;;  %v2276_v27 = vld [vmem:[%s2998_s23 + $0x50] sm:$0xff]   ;;  %s233_s20 = scalar_lea.vmem [#allocation8], %s2016_s6  ;;  %s2138_s8 = sshll.u32 %s2816_s15, 9 }
  0x53   : > { %v2140_v2 = vld [vmem:[%s2998_s23] sm:$0xff]   ;;  %v2237_v4 = vunpack.c.l.bf16 %v2290_v1  ;;  %v2238_v9 = vunpack.c.h.bf16 %v2290_v1  ;;  %v2267_v15 = vld [vmem:[%s2998_s23 + $0x8] sm:$0xff]   ;;  %v2241_v20 = vunpack.c.l.bf16 %v2291_v13  ;;  %v2242_v26 = vunpack.c.h.bf16 %v2291_v13  ;;  %v2292_v28 = vld [vmem:[%s2998_s23 + $0xd0] sm:$0xff]   ;;  %s3164_s27 = scalar_lea.vmem [#allocation9], %s2330_s22  ;;  %s3467_s30 = scalar_lea.hbm %s3524_s3, %s2138_s8 }
  0x54   : > { %v2141_v5 = vunpack.c.l.bf16 %v2140_v2  ;;  %v2282_v6 = vld [vmem:[%s2998_s23 + $0x80] sm:$0xff]   ;;  %v2142_v10 = vunpack.c.h.bf16 %v2140_v2  ;;  %v2283_v16 = vld [vmem:[%s2998_s23 + $0x88] sm:$0xff]   ;;  %v2145_v22 = vunpack.c.l.bf16 %v2267_v15  ;;  %v2146_v30 = vunpack.c.h.bf16 %v2267_v15  ;;  %v2268_v32 = vld [vmem:[%s2998_s23 + $0x10] sm:$0xff]   ;;  %s1884_s21 = sshll.u32 %s3164_s27, 4  ;;  %s1868_s4 = scalar_lea.sflag [#allocation5], %s2995_s29  ;;  %s3469_s21 = int_to_ptr.vmem [resolvable:$true] %s1884_s21 }
  0x55   : > { %v2205_v8 = vunpack.c.l.bf16 %v2282_v6  ;;  %v2206_v11 = vunpack.c.h.bf16 %v2282_v6  ;;  %v2415_v14 = vpack.i.bf16 %v2237_v4, %v2173_v3  ;;  %v2417_v18 = vpack.i.bf16 %v2238_v9, %v2174_v7  ;;  %v2284_v33 = vld [vmem:[%s2998_s23 + $0x90] sm:$0xff]   ;;  %v2277_v40 = vld [vmem:[%s2998_s23 + $0x58] sm:$0xff]   ;;  %v2278_v62 = vld [vmem:[%s2998_s23 + $0x60] sm:$0xff]   ;;  %s2740_s7 = scalar_lea.vmem %s3469_s21, 19456  ;;  %p3541_p2 = scmp.ne.s32.totalorder %s3533_s25, 0 }
  0x56   : > { %v2209_v23 = vunpack.c.l.bf16 %v2283_v16  ;;  %v2419_v24 = vpack.i.bf16 %v2241_v20, %v2177_v19  ;;  %v2210_v31 = vunpack.c.h.bf16 %v2283_v16  ;;  %v2421_v34 = vpack.i.bf16 %v2242_v26, %v2178_v25  ;;  %v2293_v41 = vld [vmem:[%s2998_s23 + $0xd8] sm:$0xff]   ;;  %v2294_v63 = vld [vmem:[%s2998_s23 + $0xe0] sm:$0xff]   ;;  %v2295_v15 = vld [vmem:[%s2998_s23 + $0xe8] sm:$0xff]   ;;  %p2741_p11 = scmp.ne.s32.totalorder %s3469_s21, %s2740_s7  ;;  %s2832_s9 = smov [#allocation9]  }
  0x57   : > { %v2527_v17 = vpack.i.bf16 %v2205_v8, %v2141_v5  ;;  %2416 = vxpose.xlu0.b32.start [1/16] %v2415_v14, 128  ;;  %v2529_v21 = vpack.i.bf16 %v2206_v11, %v2142_v10  ;;  %v2181_v35 = vunpack.c.l.bf16 %v2276_v27  ;;  %v2245_v36 = vunpack.c.l.bf16 %v2292_v28  ;;  %v2269_v45 = vld [vmem:[%s2998_s23 + $0x18] sm:$0xff]   ;;  %v2270_v0 = vld [vmem:[%s2998_s23 + $0x20] sm:$0xff]   ;;  %v2279_v14 = vld [vmem:[%s2998_s23 + $0x68] sm:$0xff]   ;;  %s2744_s11 = sshll.u32 %s2832_s9, 4  ;;  %s2745_s11 = int_to_ptr.vmem [resolvable:$false] %s2744_s11 }
  0x58   : > { %v2531_v29 = vpack.i.bf16 %v2209_v23, %v2145_v22  ;;  %v2533_v37 = vpack.i.bf16 %v2210_v31, %v2146_v30  ;;  %v2149_v38 = vunpack.c.l.bf16 %v2268_v32  ;;  %v2213_v39 = vunpack.c.l.bf16 %v2284_v33  ;;  %v2285_v46 = vld [vmem:[%s2998_s23 + $0x98] sm:$0xff]   ;;  %v2286_v1 = vld [vmem:[%s2998_s23 + $0xa0] sm:$0xff]   ;;  %v2271_v16 = vld [vmem:[%s2998_s23 + $0x28] sm:$0xff]   ;;  %p2742_p9 = pnand %p2741_p11, %p3541_p2  ;;  %s2746_s19 = scalar_lea.vmem %s2745_s11, 38912 }
  0x59   : > { %2528 = vxpose.xlu1.b32.start [1/16] %v2527_v17, 128  ;;  %v2423_v42 = vpack.i.bf16 %v2245_v36, %v2181_v35  ;;  %v2182_v43 = vunpack.c.h.bf16 %v2276_v27  ;;  %v2246_v44 = vunpack.c.h.bf16 %v2292_v28  ;;  %v2150_v48 = vunpack.c.h.bf16 %v2268_v32  ;;  %v2287_v17 = vld [vmem:[%s2998_s23 + $0xa8] sm:$0xff]   ;;  %v2280_v30 = vld [vmem:[%s2998_s23 + $0x70] sm:$0xff]   ;;  %p2747_p0 = scmp.lt.s32.totalorder %s3469_s21, %s2745_s11  ;;  %p2748_p4 = scmp.lt.s32.totalorder %s2746_s19, %s2740_s7 }
  0x5a   : > { %v2535_v47 = vpack.i.bf16 %v2213_v39, %v2149_v38  ;;  %v2214_v49 = vunpack.c.h.bf16 %v2284_v33  ;;  %v2185_v51 = vunpack.c.l.bf16 %v2277_v40  ;;  %v2249_v52 = vunpack.c.l.bf16 %v2293_v41  ;;  %v2296_v31 = vld [vmem:[%s2998_s23 + $0xf0] sm:$0xff]   ;;  %p2743_p10 = pneg %p2742_p9 }
  0x5b   : > { %2418 = vxpose.xlu0.b32.cont [2/16] %v2417_v18, 128  ;;  %v2425_v50 = vpack.i.bf16 %v2246_v44, %v2182_v43  ;;  %v2153_v54 = vunpack.c.l.bf16 %v2269_v45  ;;  %v2217_v55 = vunpack.c.l.bf16 %v2285_v46  ;;  %v2186_v57 = vunpack.c.h.bf16 %v2277_v40  ;;  %v2272_v32 = vld [vmem:[%s2998_s23 + $0x30] sm:$0xff]   ;;  %p2749_p3 = por %p2748_p4, %p2747_p0 }
  0x5c   : > { %v2537_v53 = vpack.i.bf16 %v2214_v49, %v2150_v48  ;;  %v2427_v56 = vpack.i.bf16 %v2249_v52, %v2185_v51  ;;  %v2250_v58 = vunpack.c.h.bf16 %v2293_v41  ;;  %v2154_v60 = vunpack.c.h.bf16 %v2269_v45  ;;  %v2288_v33 = vld [vmem:[%s2998_s23 + $0xb0] sm:$0xff]   ;;  %v2273_v48 = vld [vmem:[%s2998_s23 + $0x38] sm:$0xff]  }
  0x5d   : > { %2530 = vxpose.xlu1.b32.cont [2/16] %v2529_v21, 128  ;;  %v2539_v59 = vpack.i.bf16 %v2217_v55, %v2153_v54  ;;  %v2218_v61 = vunpack.c.h.bf16 %v2285_v46  ;;  %v2189_v3 = vunpack.c.l.bf16 %v2278_v62  ;;  %v2253_v4 = vunpack.c.l.bf16 %v2294_v63  ;;  %v2281_v46 = vld [vmem:[%s2998_s23 + $0x78] sm:$0xff]   ;;  %p2750_p8 = pnand %p2749_p3, %p2743_p10 }
  0x5e   : > { %v2429_v2 = vpack.i.bf16 %v2250_v58, %v2186_v57  ;;  %v2157_v6 = vunpack.c.l.bf16 %v2270_v0  ;;  %v2221_v7 = vunpack.c.l.bf16 %v2286_v1  ;;  %v2190_v9 = vunpack.c.h.bf16 %v2278_v62  ;;  %v2289_v49 = vld [vmem:[%s2998_s23 + $0xb8] sm:$0xff]  }
  0x5f   : > { %2420 = vxpose.xlu0.b32.cont [3/16] %v2419_v24, 128  ;;  %v2541_v5 = vpack.i.bf16 %v2218_v61, %v2154_v60  ;;  %v2431_v8 = vpack.i.bf16 %v2253_v4, %v2189_v3  ;;  %v2254_v10 = vunpack.c.h.bf16 %v2294_v63  ;;  %v2158_v12 = vunpack.c.h.bf16 %v2270_v0 }
  0x60   : > { %v2543_v11 = vpack.i.bf16 %v2221_v7, %v2157_v6  ;;  %v2222_v13 = vunpack.c.h.bf16 %v2286_v1  ;;  %v2193_v19 = vunpack.c.l.bf16 %v2279_v14  ;;  %v2257_v20 = vunpack.c.l.bf16 %v2295_v15 }
  0x61   : > { %2532 = vxpose.xlu1.b32.cont [3/16] %v2531_v29, 128  ;;  %v2433_v18 = vpack.i.bf16 %v2254_v10, %v2190_v9  ;;  %v2161_v22 = vunpack.c.l.bf16 %v2271_v16  ;;  %v2225_v23 = vunpack.c.l.bf16 %v2287_v17  ;;  %v2194_v25 = vunpack.c.h.bf16 %v2279_v14 }
  0x62   : > { %v2545_v21 = vpack.i.bf16 %v2222_v13, %v2158_v12  ;;  %v2435_v24 = vpack.i.bf16 %v2257_v20, %v2193_v19  ;;  %v2258_v26 = vunpack.c.h.bf16 %v2295_v15  ;;  %v2162_v28 = vunpack.c.h.bf16 %v2271_v16 }
  0x63   : > { %2422 = vxpose.xlu0.b32.cont [4/16] %v2421_v34, 128  ;;  %v2547_v27 = vpack.i.bf16 %v2225_v23, %v2161_v22  ;;  %v2226_v29 = vunpack.c.h.bf16 %v2287_v17  ;;  %v2197_v35 = vunpack.c.l.bf16 %v2280_v30  ;;  %v2261_v36 = vunpack.c.l.bf16 %v2296_v31 }
  0x64   : > { %v2437_v34 = vpack.i.bf16 %v2258_v26, %v2194_v25  ;;  %v2165_v38 = vunpack.c.l.bf16 %v2272_v32  ;;  %v2229_v39 = vunpack.c.l.bf16 %v2288_v33  ;;  %v2198_v41 = vunpack.c.h.bf16 %v2280_v30 }
  0x65   : > { %2534 = vxpose.xlu1.b32.cont [4/16] %v2533_v37, 128  ;;  %v2549_v37 = vpack.i.bf16 %v2226_v29, %v2162_v28  ;;  %v2439_v40 = vpack.i.bf16 %v2261_v36, %v2197_v35  ;;  %v2166_v44 = vunpack.c.h.bf16 %v2272_v32  ;;  %v2230_v45 = vunpack.c.h.bf16 %v2288_v33 }
  0x66   : > { %v2551_v43 = vpack.i.bf16 %v2229_v39, %v2165_v38  ;;  %v2201_v51 = vunpack.c.l.bf16 %v2281_v46  ;;  %v2169_v54 = vunpack.c.l.bf16 %v2273_v48  ;;  %v2233_v55 = vunpack.c.l.bf16 %v2289_v49 }
  0x67   : > { %2424 = vxpose.xlu0.b32.cont [5/16] %v2423_v42, 128  ;;  %v2262_v42 = vunpack.c.h.bf16 %v2296_v31  ;;  %v2202_v57 = vunpack.c.h.bf16 %v2281_v46  ;;  %v2170_v60 = vunpack.c.h.bf16 %v2273_v48  ;;  %v2234_v61 = vunpack.c.h.bf16 %v2289_v49 }
  0x68   : > { %v2831_v0 = vmov 0  }
  0x69   : > { %2536 = vxpose.xlu1.b32.cont [5/16] %v2535_v47, 128  ;;  %v2297_v47 = vld [vmem:[%s2998_s23 + $0xf8] sm:$0xff]   ;;  %v2557_v63 = vpack.i.bf16 %v2234_v61, %v2170_v60  ;;  %1149 = vmatprep.mubr.bf16.mxu0 %v2831_v0 }
  0x6a   : > { %v2265_v52 = vunpack.c.l.bf16 %v2297_v47  ;;  %v2266_v58 = vunpack.c.h.bf16 %v2297_v47  ;;  %1372 = vmatprep.mubr.bf16.mxu1 %v2831_v0 }
  0x6b   : > { %2426 = vxpose.xlu0.b32.cont [6/16] %v2425_v50, 128  ;;  %v2441_v50 = vpack.i.bf16 %v2262_v42, %v2198_v41 }
  0x6c   : > { %v2445_v62 = vpack.i.bf16 %v2266_v58, %v2202_v57 }
  0x6d   : > { %2538 = vxpose.xlu1.b32.cont [6/16] %v2537_v53, 128  ;;  %v2553_v53 = vpack.i.bf16 %v2230_v45, %v2166_v44 }
  0x6f   : > { %2428 = vxpose.xlu0.b32.cont [7/16] %v2427_v56, 128  ;;  %v2443_v56 = vpack.i.bf16 %v2265_v52, %v2201_v51 }
  0x71   : > { %2540 = vxpose.xlu1.b32.cont [7/16] %v2539_v59, 128  ;;  %v2555_v59 = vpack.i.bf16 %v2233_v55, %v2169_v54 }
  0x73   : > { %2430 = vxpose.xlu0.b32.cont [8/16] %v2429_v2, 128 }
  0x75   : > { %2542 = vxpose.xlu1.b32.cont [8/16] %v2541_v5, 128 }
  0x77   : > { %2432 = vxpose.xlu0.b32.cont [9/16] %v2431_v8, 128 }
  0x79   : > { %2544 = vxpose.xlu1.b32.cont [9/16] %v2543_v11, 128 }
  0x7b   : > { %2434 = vxpose.xlu0.b32.cont [10/16] %v2433_v18, 128 }
  0x7d   : > { %2546 = vxpose.xlu1.b32.cont [10/16] %v2545_v21, 128 }
  0x7f   : > { %2436 = vxpose.xlu0.b32.cont [11/16] %v2435_v24, 128 }
  0x81   : > { %2548 = vxpose.xlu1.b32.cont [11/16] %v2547_v27, 128 }
  0x83   : > { %2438 = vxpose.xlu0.b32.cont [12/16] %v2437_v34, 128 }
  0x85   : > { %2550 = vxpose.xlu1.b32.cont [12/16] %v2549_v37, 128 }
  0x87   : > { %2440 = vxpose.xlu0.b32.cont [13/16] %v2439_v40, 128 }
  0x89   : > { %2552 = vxpose.xlu1.b32.cont [13/16] %v2551_v43, 128 }
  0x8b   : > { %2442 = vxpose.xlu0.b32.cont [14/16] %v2441_v50, 128 }
  0x8d   : > { %2554 = vxpose.xlu1.b32.cont [14/16] %v2553_v53, 128 }
  0x8f   : > { %2444 = vxpose.xlu0.b32.cont [15/16] %v2443_v56, 128 }
  0x91   : > { %2556 = vxpose.xlu1.b32.cont [15/16] %v2555_v59, 128 }
  0x93   : > { %2446 = vxpose.xlu0.b32.end [16/16] %v2445_v62, 128 }
  0x95   : > { %2558 = vxpose.xlu1.b32.end [16/16] %v2557_v63, 128 }
  0xd3   : > { %v2447_v1 = vpop.trf.xlu0 }
  0xd4   : > { %v2451_v3 = vunpack.i.h.bf16 %v2447_v1  ;;  %v2448_v4 = vunpack.i.l.bf16 %v2447_v1 }
  0xd5   : > { %v2559_v2 = vpop.trf.xlu1 }
  0xd6   : > { %v2563_v5 = vunpack.i.h.bf16 %v2559_v2  ;;  %v2560_v6 = vunpack.i.l.bf16 %v2559_v2 }
  0xd7   : > { %v2452_v7 = vpop.trf.xlu0 }
  0xd8   : > { %v2456_v8 = vunpack.i.h.bf16 %v2452_v7  ;;  %v2453_v9 = vunpack.i.l.bf16 %v2452_v7 }
  0xd9   : > { %v2564_v10 = vpop.trf.xlu1 }
  0xda   : > { %v2568_v11 = vunpack.i.h.bf16 %v2564_v10  ;;  %v2565_v12 = vunpack.i.l.bf16 %v2564_v10  ;;  %v3038_v13 = vpack.c.bf16 %v2453_v9, %v2448_v4  ;;  %v3040_v14 = vpack.c.bf16 %v2456_v8, %v2451_v3 }
  0xdb   : > { %v2457_v15 = vpop.trf.xlu0 }
  0xdc   : > { %v3042_v16 = vpack.c.bf16 %v2565_v12, %v2560_v6  ;;  %v3044_v17 = vpack.c.bf16 %v2568_v11, %v2563_v5  ;;  %v2461_v19 = vunpack.i.h.bf16 %v2457_v15  ;;  %v2458_v20 = vunpack.i.l.bf16 %v2457_v15 }
  0xdd   : > { %v2569_v18 = vpop.trf.xlu1 }
  0xde   : > { %v2573_v21 = vunpack.i.h.bf16 %v2569_v18  ;;  %v2570_v22 = vunpack.i.l.bf16 %v2569_v18 }
  0xdf   : > { %v2462_v23 = vpop.trf.xlu0 }
  0xe0   : > { %v2466_v24 = vunpack.i.h.bf16 %v2462_v23  ;;  %v2463_v25 = vunpack.i.l.bf16 %v2462_v23 }
  0xe1   : > { %v2574_v26 = vpop.trf.xlu1 }
  0xe2   : > { %v2578_v27 = vunpack.i.h.bf16 %v2574_v26  ;;  %v2575_v28 = vunpack.i.l.bf16 %v2574_v26  ;;  %v3046_v29 = vpack.c.bf16 %v2463_v25, %v2458_v20  ;;  %v3048_v30 = vpack.c.bf16 %v2466_v24, %v2461_v19 }
  0xe3   : > { %v3050_v31 = vpop.trf.xlu0 }
  0xe4   : > { %v3052_v32 = vpack.c.bf16 %v2575_v28, %v2570_v22  ;;  %v3054_v33 = vpack.c.bf16 %v2578_v27, %v2573_v21 }
  0xe5   : > { %v3056_v34 = vpop.trf.xlu1 }
  0xe7   : > { %v3058_v35 = vpop.trf.xlu0 }
  0xe9   : > { %v3060_v36 = vpop.trf.xlu1 }
  0xeb   : > { %v3062_v37 = vpop.trf.xlu0 }
  0xed   : > { %v3064_v38 = vpop.trf.xlu1 }
  0xef   : > { %v3066_v39 = vpop.trf.xlu0 }
  0xf1   : > { %v3068_v40 = vpop.trf.xlu1 }
  0xf3   : > { %v3070_v41 = vpop.trf.xlu0 }
  0xf5   : > { %v3072_v42 = vpop.trf.xlu1 }
  0xf7   : > { %v3074_v43 = vpop.trf.xlu0 }
  0xf8   : > { %v2496_v28 = vunpack.i.h.bf16 %v3074_v43 }
  0xf9   : > { %v3076_v44 = vpop.trf.xlu1 }
  0xfb   : > { %v2497_v45 = vpop.trf.xlu0 }
  0xfc   : > { %v2501_v22 = vunpack.i.h.bf16 %v2497_v45  ;;  %v2498_v23 = vunpack.i.l.bf16 %v2497_v45  ;;  %v2491_v45 = vunpack.i.h.bf16 %v3070_v41 }
  0xfd   : > { %v3078_v46 = vpop.trf.xlu1 }
  0xff   : > { %v2502_v47 = vpop.trf.xlu0 }
 0x100   : > { %v2506_v12 = vunpack.i.h.bf16 %v2502_v47  ;;  %v2503_v15 = vunpack.i.l.bf16 %v2502_v47  ;;  %v2493_v47 = vunpack.i.l.bf16 %v3074_v43 }
 0x101   : > { %v2614_v48 = vpop.trf.xlu1 }
 0x102   : > { %v2618_v24 = vunpack.i.h.bf16 %v2614_v48  ;;  %v2615_v25 = vunpack.i.l.bf16 %v2614_v48  ;;  %v2608_v48 = vunpack.i.h.bf16 %v3076_v44 }
 0x103   : > { %v2507_v49 = vpop.trf.xlu0 }
 0x104   : > { %v2511_v4 = vunpack.i.h.bf16 %v2507_v49  ;;  %v2508_v5 = vunpack.i.l.bf16 %v2507_v49  ;;  %v2319_v49 = vpack.c.bf16 %v2503_v15, %v2498_v23  ;;  %v2649_v15 = vld [vmem:[#allocation3 + $0x50] sm:$0xff]   ;;  %v2655_v23 = vld [vmem:[#allocation3 + $0x80] sm:$0xff]  }
 0x105   : > { %v2619_v50 = vpop.trf.xlu1 }
 0x106   : > { %v2623_v20 = vunpack.i.h.bf16 %v2619_v50  ;;  %v2620_v21 = vunpack.i.l.bf16 %v2619_v50  ;;  %v2610_v50 = vunpack.i.l.bf16 %v3078_v46 }
 0x107   : > { %v2512_v51 = vpop.trf.xlu0 }
 0x108   : > { %v2516_v55 = vunpack.i.h.bf16 %v2512_v51  ;;  %v2513_v56 = vunpack.i.l.bf16 %v2512_v51  ;;  %v2321_v51 = vpack.c.bf16 %v2506_v12, %v2501_v22  ;;  %v2654_v22 = vld [vmem:[#allocation3 + $0x78] sm:$0xff]  }
 0x109   : > { %v2624_v52 = vpop.trf.xlu1 }
 0x10a   : > { %v2628_v8 = vunpack.i.h.bf16 %v2624_v52  ;;  %v2625_v9 = vunpack.i.l.bf16 %v2624_v52  ;;  %v2323_v18 = vpack.c.bf16 %v2513_v56, %v2508_v5  ;;  %v2325_v19 = vpack.c.bf16 %v2516_v55, %v2511_v4 }
 0x10b   : > { %v2517_v53 = vpop.trf.xlu0  ;;  %v2613_v52 = vunpack.i.h.bf16 %v3078_v46  ;;  %v2318_v55 = vpack.c.bf16 %v2615_v25, %v2610_v50  ;;  %v2486_v56 = vunpack.i.h.bf16 %v3066_v39  ;;  %v2317_v46 = vpack.c.bf16 %v2496_v28, %v2491_v45  ;;  %v2657_v25 = vld [vmem:[#allocation3 + $0x90] sm:$0xff]  }
 0x10c   : > { %v2518_v58 = vunpack.i.l.bf16 %v2517_v53  ;;  %v2521_v59 = vunpack.i.h.bf16 %v2517_v53  ;;  %v2322_v26 = vpack.c.bf16 %v2625_v9, %v2620_v21  ;;  %v2324_v27 = vpack.c.bf16 %v2628_v8, %v2623_v20  ;;  %v2652_v20 = vld [vmem:[#allocation3 + $0x68] sm:$0xff]   ;;  %v2653_v21 = vld [vmem:[#allocation3 + $0x70] sm:$0xff]  }
 0x10d   : > { %v2629_v54 = vpop.trf.xlu1  ;;  %v2488_v53 = vunpack.i.l.bf16 %v3070_v41  ;;  %v2320_v43 = vpack.c.bf16 %v2618_v24, %v2613_v52  ;;  %v2481_v41 = vunpack.i.h.bf16 %v3062_v37  ;;  %v2593_v4 = vunpack.i.h.bf16 %v3064_v38  ;;  %v2656_v24 = vld [vmem:[#allocation3 + $0x88] sm:$0xff]  }
 0x10e   : > { %v2630_v60 = vunpack.i.l.bf16 %v2629_v54  ;;  %v2633_v61 = vunpack.i.h.bf16 %v2629_v54  ;;  %v2605_v54 = vunpack.i.l.bf16 %v3076_v44  ;;  %v2598_v44 = vunpack.i.h.bf16 %v3068_v40 }
 0x10f   : > { %v2522_v57 = vpop.trf.xlu0  ;;  %v2590_v5 = vunpack.i.l.bf16 %v3064_v38  ;;  %v2580_v38 = vunpack.i.l.bf16 %v3056_v34 }
 0x110   : > { %v2523_v63 = vunpack.i.l.bf16 %v2522_v57  ;;  %v2526_v1 = vunpack.i.h.bf16 %v2522_v57  ;;  %v2483_v57 = vunpack.i.l.bf16 %v3066_v39 }
 0x111   : > { %v2634_v62 = vpop.trf.xlu1 }
 0x112   : > { %v2635_v2 = vunpack.i.l.bf16 %v2634_v62  ;;  %v2638_v3 = vunpack.i.h.bf16 %v2634_v62  ;;  %v2327_v6 = vpack.c.bf16 %v2523_v63, %v2518_v58  ;;  %v2329_v7 = vpack.c.bf16 %v2526_v1, %v2521_v59 }
 0x113   : > { %v2315_v58 = vpack.c.bf16 %v2493_v47, %v2488_v53  ;;  %v2603_v59 = vunpack.i.h.bf16 %v3072_v42  ;;  %v2595_v62 = vunpack.i.l.bf16 %v3068_v40  ;;  %v2476_v1 = vunpack.i.h.bf16 %v3058_v35 }
 0x114   : > { %v2326_v10 = vpack.c.bf16 %v2635_v2, %v2630_v60  ;;  %v2328_v11 = vpack.c.bf16 %v2638_v3, %v2633_v61  ;;  %1117 = vmatprep.subr.bf16.mxu0 %v2327_v6  ;;  %1340 = vmatprep.subr.bf16.mxu1 %v2329_v7  ;;  %v2600_v60 = vunpack.i.l.bf16 %v3072_v42  ;;  %v2478_v61 = vunpack.i.l.bf16 %v3062_v37 }
 0x115   : > { %v2316_v39 = vpack.c.bf16 %v2608_v48, %v2603_v59  ;;  %v2473_v2 = vunpack.i.l.bf16 %v3058_v35  ;;  %v2313_v42 = vpack.c.bf16 %v2486_v56, %v2481_v41  ;;  %v2471_v37 = vunpack.i.h.bf16 %v3050_v31 }
 0x116   : > { %1118 = vmatpush1.bf16.msra.mxu0 %v2326_v10  ;;  %1341 = vmatpush1.bf16.msra.mxu1 %v2328_v11  ;;  %v2314_v63 = vpack.c.bf16 %v2605_v54, %v2600_v60  ;;  %v2311_v3 = vpack.c.bf16 %v2483_v57, %v2478_v61  ;;  %v2468_v6 = vunpack.i.l.bf16 %v3050_v31  ;;  %v2588_v40 = vunpack.i.h.bf16 %v3060_v36 }
 0x117   : > { %1119 = vmatprep.subr.bf16.mxu0 %v2323_v18  ;;  %1342 = vmatprep.subr.bf16.mxu1 %v2325_v19  ;;  %v2585_v7 = vunpack.i.l.bf16 %v3060_v36  ;;  %v2310_v8 = vpack.c.bf16 %v2595_v62, %v2590_v5  ;;  %v2312_v35 = vpack.c.bf16 %v2598_v44, %v2593_v4  ;;  %v2309_v10 = vpack.c.bf16 %v2476_v1, %v2471_v37  ;;  %v2648_v36 = vld [vmem:[#allocation3 + $0x48] sm:$0xff]   ;;  %v2650_v18 = vld [vmem:[#allocation3 + $0x58] sm:$0xff]   ;;  %v2651_v19 = vld [vmem:[#allocation3 + $0x60] sm:$0xff]  }
 0x118   : > { %v2307_v9 = vpack.c.bf16 %v2473_v2, %v2468_v6  ;;  %v2583_v11 = vunpack.i.h.bf16 %v3056_v34  ;;  %v2639_v34 = vld [vmem:[#allocation3] sm:$0xff]  }
 0x119   : > { %v2306_v12 = vpack.c.bf16 %v2585_v7, %v2580_v38 }
 0x11a   : > { %1120 = vmatpush1.bf16.msra.mxu0 %v2322_v26  ;;  %1343 = vmatpush1.bf16.msra.mxu1 %v2324_v27  ;;  %v2308_v31 = vpack.c.bf16 %v2588_v40, %v2583_v11  ;;  %v823_v26 = vlaneseq }
 0x11b   : > { %1121 = vmatprep.subr.bf16.mxu0 %v2319_v49  ;;  %1344 = vmatprep.subr.bf16.mxu1 %v2321_v51  ;;  %v821_v49 = vld [vmem:[%s233_s20] sm:$0xf] }
 0x11c   : > { %v824_v27 = vshrl.u32 %v823_v26, 7 }
 0x11e   : > { %1122 = vmatpush1.bf16.msra.mxu0 %v2318_v55  ;;  %1345 = vmatpush1.bf16.msra.mxu1 %v2320_v43  ;;  %v825_v28 = vsub.s32 0, %v824_v27  ;;  %v833_v47 = vsub.s32 2, %v824_v27  ;;  %v829_v51 = vsub.s32 1, %v824_v27  ;;  %v837_v52 = vsub.s32 3, %v824_v27 }
 0x11f   : > { %1123 = vmatprep.subr.bf16.mxu0 %v2315_v58  ;;  %1346 = vmatprep.subr.bf16.mxu1 %v2317_v46 }
 0x120   : > { %v3151_v50 = vrot.slane %v821_v49, %v825_v28  ;;  %v3153_v45 = vrot.slane %v821_v49, %v833_v47  ;;  %v3156_v53 = vrot.slane %v821_v49, %v829_v51 }
 0x122   : > { %1124 = vmatpush1.bf16.msra.mxu0 %v2314_v63  ;;  %1347 = vmatpush1.bf16.msra.mxu1 %v2316_v39 }
 0x123   : > { %1125 = vmatprep.subr.bf16.mxu0 %v2311_v3  ;;  %1348 = vmatprep.subr.bf16.mxu1 %v2313_v42 }
 0x126   : > { %1126 = vmatpush1.bf16.msra.mxu0 %v2310_v8  ;;  %1349 = vmatpush1.bf16.msra.mxu1 %v2312_v35 }
 0x127   : > { %1127 = vmatprep.subr.bf16.mxu0 %v2307_v9  ;;  %1350 = vmatprep.subr.bf16.mxu1 %v2309_v10 }
 0x12a   : > { %1128 = vmatpush1.bf16.msra.mxu0 %v2306_v12  ;;  %1351 = vmatpush1.bf16.msra.mxu1 %v2308_v31 }
 0x12b   : > { %1129 = vmatprep.subr.bf16.mxu0 %v3046_v29  ;;  %1352 = vmatprep.subr.bf16.mxu1 %v3048_v30  ;;  %v2640_v29 = vld [vmem:[#allocation3 + $0x8] sm:$0xff]   ;;  %v2645_v30 = vld [vmem:[#allocation3 + $0x30] sm:$0xff]  }
 0x12e   : > { %1130 = vmatpush1.bf16.msra.mxu0 %v3052_v32  ;;  %1353 = vmatpush1.bf16.msra.mxu1 %v3054_v33  ;;  %v2646_v32 = vld [vmem:[#allocation3 + $0x38] sm:$0xff]   ;;  %v2647_v33 = vld [vmem:[#allocation3 + $0x40] sm:$0xff]  }
 0x12f   : > { %1131 = vmatprep.subr.bf16.mxu0 %v3038_v13  ;;  %1354 = vmatprep.subr.bf16.mxu1 %v3040_v14  ;;  %v2641_v13 = vld [vmem:[#allocation3 + $0x10] sm:$0xff]   ;;  %v2642_v14 = vld [vmem:[#allocation3 + $0x18] sm:$0xff]  }
 0x132   : > { %1132 = vmatpush1.bf16.msra.mxu0 %v3042_v16  ;;  %1355 = vmatpush1.bf16.msra.mxu1 %v3044_v17  ;;  %v2643_v16 = vld [vmem:[#allocation3 + $0x20] sm:$0xff]   ;;  %v2644_v17 = vld [vmem:[#allocation3 + $0x28] sm:$0xff]  }
 0x135   : > { %1150 = vmatmul.mubr.bf16.vlgmr.msra.gmra.mxu0 %v2639_v34  ;;  %1373 = vmatmul.mubr.bf16.vlgmr.msra.gmra.mxu1 %v2639_v34 }
 0x136   : > { %1159 = vmatprep.mubr.bf16.mxu0 %v2831_v0  ;;  %1382 = vmatprep.mubr.bf16.mxu1 %v2831_v0 }
 0x13d   : > { %1160 = vmatmul.mubr.bf16.gmra.mxu0 %v2640_v29  ;;  %1383 = vmatmul.mubr.bf16.gmra.mxu1 %v2640_v29 }
 0x13e   : > { %1169 = vmatprep.mubr.bf16.mxu0 %v2831_v0  ;;  %1392 = vmatprep.mubr.bf16.mxu1 %v2831_v0 }
 0x145   : > { %1170 = vmatmul.mubr.bf16.gmra.mxu0 %v2641_v13  ;;  %1393 = vmatmul.mubr.bf16.gmra.mxu1 %v2641_v13 }
 0x146   : > { %1179 = vmatprep.mubr.bf16.mxu0 %v2831_v0  ;;  %1402 = vmatprep.mubr.bf16.mxu1 %v2831_v0 }
 0x14d   : > { %1180 = vmatmul.mubr.bf16.gmra.mxu0 %v2642_v14  ;;  %1403 = vmatmul.mubr.bf16.gmra.mxu1 %v2642_v14 }
 0x14e   : > { %1189 = vmatprep.mubr.bf16.mxu0 %v2831_v0  ;;  %1412 = vmatprep.mubr.bf16.mxu1 %v2831_v0 }
 0x155   : > { %1190 = vmatmul.mubr.bf16.gmra.mxu0 %v2643_v16  ;;  %1413 = vmatmul.mubr.bf16.gmra.mxu1 %v2643_v16 }
 0x156   : > { %1199 = vmatprep.mubr.bf16.mxu0 %v2831_v0  ;;  %1422 = vmatprep.mubr.bf16.mxu1 %v2831_v0 }
 0x15d   : > { %1200 = vmatmul.mubr.bf16.gmra.mxu0 %v2644_v17  ;;  %1423 = vmatmul.mubr.bf16.gmra.mxu1 %v2644_v17 }
 0x15e   : > { %1209 = vmatprep.mubr.bf16.mxu0 %v2831_v0  ;;  %1432 = vmatprep.mubr.bf16.mxu1 %v2831_v0 }
 0x165   : > { %1210 = vmatmul.mubr.bf16.gmra.mxu0 %v2645_v30  ;;  %1433 = vmatmul.mubr.bf16.gmra.mxu1 %v2645_v30 }
 0x166   : > { %1219 = vmatprep.mubr.bf16.mxu0 %v2831_v0  ;;  %1442 = vmatprep.mubr.bf16.mxu1 %v2831_v0 }
 0x16d   : > { %1220 = vmatmul.mubr.bf16.gmra.mxu0 %v2646_v32  ;;  %1443 = vmatmul.mubr.bf16.gmra.mxu1 %v2646_v32 }
 0x16e   : > { %1229 = vmatprep.mubr.bf16.mxu0 %v2831_v0  ;;  %1452 = vmatprep.mubr.bf16.mxu1 %v2831_v0 }
 0x175   : > { %1230 = vmatmul.mubr.bf16.gmra.mxu0 %v2647_v33  ;;  %1453 = vmatmul.mubr.bf16.gmra.mxu1 %v2647_v33 }
 0x176   : > { %1239 = vmatprep.mubr.bf16.mxu0 %v2831_v0  ;;  %1462 = vmatprep.mubr.bf16.mxu1 %v2831_v0 }
 0x17d   : > { %1240 = vmatmul.mubr.bf16.gmra.mxu0 %v2648_v36  ;;  %1463 = vmatmul.mubr.bf16.gmra.mxu1 %v2648_v36 }
 0x17e   : > { %1249 = vmatprep.mubr.bf16.mxu0 %v2831_v0  ;;  %1472 = vmatprep.mubr.bf16.mxu1 %v2831_v0 }
 0x185   : > { %1250 = vmatmul.mubr.bf16.gmra.mxu0 %v2649_v15  ;;  %1473 = vmatmul.mubr.bf16.gmra.mxu1 %v2649_v15 }
 0x186   : > { %1259 = vmatprep.mubr.bf16.mxu0 %v2831_v0  ;;  %1482 = vmatprep.mubr.bf16.mxu1 %v2831_v0 }
 0x18d   : > { %1260 = vmatmul.mubr.bf16.gmra.mxu0 %v2650_v18  ;;  %1483 = vmatmul.mubr.bf16.gmra.mxu1 %v2650_v18 }
 0x18e   : > { %1269 = vmatprep.mubr.bf16.mxu0 %v2831_v0  ;;  %1492 = vmatprep.mubr.bf16.mxu1 %v2831_v0 }
 0x195   : > { %1270 = vmatmul.mubr.bf16.gmra.mxu0 %v2651_v19  ;;  %1493 = vmatmul.mubr.bf16.gmra.mxu1 %v2651_v19 }
 0x196   : > { %1279 = vmatprep.mubr.bf16.mxu0 %v2831_v0  ;;  %1502 = vmatprep.mubr.bf16.mxu1 %v2831_v0 }
 0x19d   : > { %1280 = vmatmul.mubr.bf16.gmra.mxu0 %v2652_v20  ;;  %1503 = vmatmul.mubr.bf16.gmra.mxu1 %v2652_v20 }
 0x19e   : > { %1289 = vmatprep.mubr.bf16.mxu0 %v2831_v0  ;;  %1512 = vmatprep.mubr.bf16.mxu1 %v2831_v0 }
 0x1a5   : > { %1290 = vmatmul.mubr.bf16.gmra.mxu0 %v2653_v21  ;;  %1513 = vmatmul.mubr.bf16.gmra.mxu1 %v2653_v21 }
 0x1a6   : > { %1299 = vmatprep.mubr.bf16.mxu0 %v2831_v0  ;;  %1522 = vmatprep.mubr.bf16.mxu1 %v2831_v0 }
 0x1ad   : > { %1300 = vmatmul.mubr.bf16.gmra.mxu0 %v2654_v22  ;;  %1523 = vmatmul.mubr.bf16.gmra.mxu1 %v2654_v22 }
 0x1ae   : > { %1309 = vmatprep.mubr.bf16.mxu0 %v2831_v0  ;;  %1532 = vmatprep.mubr.bf16.mxu1 %v2831_v0 }
 0x1b5   : > { %1310 = vmatmul.mubr.bf16.gmra.mxu0 %v2655_v23  ;;  %1533 = vmatmul.mubr.bf16.gmra.mxu1 %v2655_v23 }
 0x1b6   : > { %1319 = vmatprep.mubr.bf16.mxu0 %v2831_v0  ;;  %1542 = vmatprep.mubr.bf16.mxu1 %v2831_v0 }
 0x1bd   : > { %1320 = vmatmul.mubr.bf16.gmra.mxu0 %v2656_v24  ;;  %1543 = vmatmul.mubr.bf16.gmra.mxu1 %v2656_v24 }
 0x1be   : > { %1329 = vmatprep.mubr.bf16.mxu0 %v2831_v0  ;;  %1552 = vmatprep.mubr.bf16.mxu1 %v2831_v0  ;;  %v3158_v0 = vrot.slane %v821_v49, %v837_v52 }
 0x1c5   : > { %1330 = vmatmul.mubr.bf16.gmra.mxu0 %v2657_v25  ;;  %1553 = vmatmul.mubr.bf16.gmra.mxu1 %v2657_v25 }
 0x1f5   : > { %v1151_v48 = vpop.f32.mrf.mxu0  ;;  %v1374_v54 = vpop.f32.mrf.mxu1 }
 0x1f6   : > { %v1152_v55 = vadd.f32 %v1151_v48, %v3151_v50  ;;  %v1375_v43 = vadd.f32 %v1374_v54, %v3153_v45 }
 0x1f7   : > { %v1153_v56 = vpop.f32.mrf.mxu0  ;;  %v1376_v57 = vpop.f32.mrf.mxu1 }
 0x1f8   : > { %v1563_v58 = vmax.f32 %v1152_v55, 0.0  ;;  %v1565_v46 = vmax.f32 %v1375_v43, 0.0  ;;  %v1154_v59 = vadd.f32 %v1153_v56, %v3156_v53  ;;  %v1377_v60 = vadd.f32 %v1376_v57, %v3158_v0 }
 0x1f9   : > { %v1155_v41 = vpop.f32.mrf.mxu0  ;;  %v1378_v61 = vpop.f32.mrf.mxu1 }
 0x1fa   : > { %1715 = vst [vmem:[%s3164_s27] sm:$0xff] %v1563_v58  ;;  %1717 = vst [vmem:[%s3164_s27 + $0x10] sm:$0xff] %v1565_v46  ;;  %v1564_v44 = vmax.f32 %v1154_v59, 0.0  ;;  %v1566_v62 = vmax.f32 %v1377_v60, 0.0  ;;  %v1156_v63 = vadd.f32 %v1155_v41, %v3151_v50  ;;  %v1379_v39 = vadd.f32 %v1378_v61, %v3153_v45 }
 0x1fb   : > { %v1157_v1 = vpop.f32.mrf.mxu0  ;;  %v1380_v2 = vpop.f32.mrf.mxu1 }
 0x1fc   : > { %1716 = vst [vmem:[%s3164_s27 + $0x8] sm:$0xff] %v1564_v44  ;;  %1718 = vst [vmem:[%s3164_s27 + $0x18] sm:$0xff] %v1566_v62  ;;  %v1567_v3 = vmax.f32 %v1156_v63, 0.0  ;;  %v1569_v42 = vmax.f32 %v1379_v39, 0.0  ;;  %v1158_v4 = vadd.f32 %v1157_v1, %v3156_v53  ;;  %v1381_v5 = vadd.f32 %v1380_v2, %v3158_v0 }
 0x1fd   : > { %v1161_v37 = vpop.f32.mrf.mxu0  ;;  %v1384_v6 = vpop.f32.mrf.mxu1 }
 0x1fe   : > { %1719 = vst [vmem:[%s3164_s27 + $0x20] sm:$0xff] %v1567_v3  ;;  %1721 = vst [vmem:[%s3164_s27 + $0x30] sm:$0xff] %v1569_v42  ;;  %v1568_v40 = vmax.f32 %v1158_v4, 0.0  ;;  %v1570_v7 = vmax.f32 %v1381_v5, 0.0  ;;  %v1162_v8 = vadd.f32 %v1161_v37, %v3151_v50  ;;  %v1385_v35 = vadd.f32 %v1384_v6, %v3153_v45 }
 0x1ff   : > { %v1163_v9 = vpop.f32.mrf.mxu0  ;;  %v1386_v10 = vpop.f32.mrf.mxu1 }
 0x200   : > { %1720 = vst [vmem:[%s3164_s27 + $0x28] sm:$0xff] %v1568_v40  ;;  %1722 = vst [vmem:[%s3164_s27 + $0x38] sm:$0xff] %v1570_v7  ;;  %v1571_v11 = vmax.f32 %v1162_v8, 0.0  ;;  %v1573_v38 = vmax.f32 %v1385_v35, 0.0  ;;  %v1164_v12 = vadd.f32 %v1163_v9, %v3156_v53  ;;  %v1387_v31 = vadd.f32 %v1386_v10, %v3158_v0 }
 0x201   : > { %v1165_v34 = vpop.f32.mrf.mxu0  ;;  %v1388_v29 = vpop.f32.mrf.mxu1 }
 0x202   : > { %1723 = vst [vmem:[%s3164_s27 + $0x40] sm:$0xff] %v1571_v11  ;;  %1725 = vst [vmem:[%s3164_s27 + $0x50] sm:$0xff] %v1573_v38  ;;  %v1572_v13 = vmax.f32 %v1164_v12, 0.0  ;;  %v1574_v14 = vmax.f32 %v1387_v31, 0.0  ;;  %v1166_v16 = vadd.f32 %v1165_v34, %v3151_v50  ;;  %v1389_v17 = vadd.f32 %v1388_v29, %v3153_v45 }
 0x203   : > { %v1167_v30 = vpop.f32.mrf.mxu0  ;;  %v1390_v32 = vpop.f32.mrf.mxu1 }
 0x204   : > { %1724 = vst [vmem:[%s3164_s27 + $0x48] sm:$0xff] %v1572_v13  ;;  %1726 = vst [vmem:[%s3164_s27 + $0x58] sm:$0xff] %v1574_v14  ;;  %v1575_v33 = vmax.f32 %v1166_v16, 0.0  ;;  %v1577_v36 = vmax.f32 %v1389_v17, 0.0  ;;  %v1168_v15 = vadd.f32 %v1167_v30, %v3156_v53  ;;  %v1391_v18 = vadd.f32 %v1390_v32, %v3158_v0 }
 0x205   : > { %v1171_v19 = vpop.f32.mrf.mxu0  ;;  %v1394_v20 = vpop.f32.mrf.mxu1 }
 0x206   : > { %1727 = vst [vmem:[%s3164_s27 + $0x60] sm:$0xff] %v1575_v33  ;;  %1729 = vst [vmem:[%s3164_s27 + $0x70] sm:$0xff] %v1577_v36  ;;  %v1576_v21 = vmax.f32 %v1168_v15, 0.0  ;;  %v1578_v22 = vmax.f32 %v1391_v18, 0.0  ;;  %v1172_v23 = vadd.f32 %v1171_v19, %v3151_v50  ;;  %v1395_v24 = vadd.f32 %v1394_v20, %v3153_v45 }
 0x207   : > { %v1173_v25 = vpop.f32.mrf.mxu0  ;;  %v1396_v26 = vpop.f32.mrf.mxu1 }
 0x208   : > { %1728 = vst [vmem:[%s3164_s27 + $0x68] sm:$0xff] %v1576_v21  ;;  %1730 = vst [vmem:[%s3164_s27 + $0x78] sm:$0xff] %v1578_v22  ;;  %v1579_v27 = vmax.f32 %v1172_v23, 0.0  ;;  %v1581_v28 = vmax.f32 %v1395_v24, 0.0  ;;  %v1174_v47 = vadd.f32 %v1173_v25, %v3156_v53  ;;  %v1397_v49 = vadd.f32 %v1396_v26, %v3158_v0 }
 0x209   : > { %v1175_v51 = vpop.f32.mrf.mxu0  ;;  %v1398_v52 = vpop.f32.mrf.mxu1 }
 0x20a   : > { %1731 = vst [vmem:[%s3164_s27 + $0x80] sm:$0xff] %v1579_v27  ;;  %1733 = vst [vmem:[%s3164_s27 + $0x90] sm:$0xff] %v1581_v28  ;;  %v1580_v48 = vmax.f32 %v1174_v47, 0.0  ;;  %v1582_v54 = vmax.f32 %v1397_v49, 0.0  ;;  %v1176_v55 = vadd.f32 %v1175_v51, %v3151_v50  ;;  %v1399_v43 = vadd.f32 %v1398_v52, %v3153_v45 }
 0x20b   : > { %v1177_v56 = vpop.f32.mrf.mxu0  ;;  %v1400_v57 = vpop.f32.mrf.mxu1 }
 0x20c   : > { %1732 = vst [vmem:[%s3164_s27 + $0x88] sm:$0xff] %v1580_v48  ;;  %1734 = vst [vmem:[%s3164_s27 + $0x98] sm:$0xff] %v1582_v54  ;;  %v1583_v58 = vmax.f32 %v1176_v55, 0.0  ;;  %v1585_v46 = vmax.f32 %v1399_v43, 0.0  ;;  %v1178_v59 = vadd.f32 %v1177_v56, %v3156_v53  ;;  %v1401_v60 = vadd.f32 %v1400_v57, %v3158_v0 }
 0x20d   : > { %v1181_v41 = vpop.f32.mrf.mxu0  ;;  %v1404_v61 = vpop.f32.mrf.mxu1 }
 0x20e   : > { %1735 = vst [vmem:[%s3164_s27 + $0xa0] sm:$0xff] %v1583_v58  ;;  %1737 = vst [vmem:[%s3164_s27 + $0xb0] sm:$0xff] %v1585_v46  ;;  %v1584_v44 = vmax.f32 %v1178_v59, 0.0  ;;  %v1586_v62 = vmax.f32 %v1401_v60, 0.0  ;;  %v1182_v63 = vadd.f32 %v1181_v41, %v3151_v50  ;;  %v1405_v39 = vadd.f32 %v1404_v61, %v3153_v45 }
 0x20f   : > { %v1183_v1 = vpop.f32.mrf.mxu0  ;;  %v1406_v2 = vpop.f32.mrf.mxu1 }
 0x210   : > { %1736 = vst [vmem:[%s3164_s27 + $0xa8] sm:$0xff] %v1584_v44  ;;  %1738 = vst [vmem:[%s3164_s27 + $0xb8] sm:$0xff] %v1586_v62  ;;  %v1587_v3 = vmax.f32 %v1182_v63, 0.0  ;;  %v1589_v42 = vmax.f32 %v1405_v39, 0.0  ;;  %v1184_v4 = vadd.f32 %v1183_v1, %v3156_v53  ;;  %v1407_v5 = vadd.f32 %v1406_v2, %v3158_v0 }
 0x211   : > { %v1185_v37 = vpop.f32.mrf.mxu0  ;;  %v1408_v6 = vpop.f32.mrf.mxu1 }
 0x212   : > { %1739 = vst [vmem:[%s3164_s27 + $0xc0] sm:$0xff] %v1587_v3  ;;  %1741 = vst [vmem:[%s3164_s27 + $0xd0] sm:$0xff] %v1589_v42  ;;  %v1588_v40 = vmax.f32 %v1184_v4, 0.0  ;;  %v1590_v7 = vmax.f32 %v1407_v5, 0.0  ;;  %v1186_v8 = vadd.f32 %v1185_v37, %v3151_v50  ;;  %v1409_v35 = vadd.f32 %v1408_v6, %v3153_v45 }
 0x213   : > { %v1187_v9 = vpop.f32.mrf.mxu0  ;;  %v1410_v10 = vpop.f32.mrf.mxu1 }
 0x214   : > { %1740 = vst [vmem:[%s3164_s27 + $0xc8] sm:$0xff] %v1588_v40  ;;  %1742 = vst [vmem:[%s3164_s27 + $0xd8] sm:$0xff] %v1590_v7  ;;  %v1591_v11 = vmax.f32 %v1186_v8, 0.0  ;;  %v1593_v38 = vmax.f32 %v1409_v35, 0.0  ;;  %v1188_v12 = vadd.f32 %v1187_v9, %v3156_v53  ;;  %v1411_v31 = vadd.f32 %v1410_v10, %v3158_v0 }
 0x215   : > { %v1191_v34 = vpop.f32.mrf.mxu0  ;;  %v1414_v29 = vpop.f32.mrf.mxu1 }
 0x216   : > { %1743 = vst [vmem:[%s3164_s27 + $0xe0] sm:$0xff] %v1591_v11  ;;  %1745 = vst [vmem:[%s3164_s27 + $0xf0] sm:$0xff] %v1593_v38  ;;  %v1592_v13 = vmax.f32 %v1188_v12, 0.0  ;;  %v1594_v14 = vmax.f32 %v1411_v31, 0.0  ;;  %v1192_v16 = vadd.f32 %v1191_v34, %v3151_v50  ;;  %v1415_v17 = vadd.f32 %v1414_v29, %v3153_v45 }
 0x217   : > { %v1193_v30 = vpop.f32.mrf.mxu0  ;;  %v1416_v32 = vpop.f32.mrf.mxu1 }
 0x218   : > { %1744 = vst [vmem:[%s3164_s27 + $0xe8] sm:$0xff] %v1592_v13  ;;  %1746 = vst [vmem:[%s3164_s27 + $0xf8] sm:$0xff] %v1594_v14  ;;  %v1595_v33 = vmax.f32 %v1192_v16, 0.0  ;;  %v1597_v36 = vmax.f32 %v1415_v17, 0.0  ;;  %v1194_v15 = vadd.f32 %v1193_v30, %v3156_v53  ;;  %v1417_v18 = vadd.f32 %v1416_v32, %v3158_v0 }
 0x219   : > { %v1195_v19 = vpop.f32.mrf.mxu0  ;;  %v1418_v20 = vpop.f32.mrf.mxu1 }
 0x21a   : > { %1747 = vst [vmem:[%s3164_s27 + $0x100] sm:$0xff] %v1595_v33  ;;  %1749 = vst [vmem:[%s3164_s27 + $0x110] sm:$0xff] %v1597_v36  ;;  %v1596_v21 = vmax.f32 %v1194_v15, 0.0  ;;  %v1598_v22 = vmax.f32 %v1417_v18, 0.0  ;;  %v1196_v23 = vadd.f32 %v1195_v19, %v3151_v50  ;;  %v1419_v24 = vadd.f32 %v1418_v20, %v3153_v45 }
 0x21b   : > { %v1197_v25 = vpop.f32.mrf.mxu0  ;;  %v1420_v26 = vpop.f32.mrf.mxu1 }
 0x21c   : > { %1748 = vst [vmem:[%s3164_s27 + $0x108] sm:$0xff] %v1596_v21  ;;  %1750 = vst [vmem:[%s3164_s27 + $0x118] sm:$0xff] %v1598_v22  ;;  %v1599_v27 = vmax.f32 %v1196_v23, 0.0  ;;  %v1601_v28 = vmax.f32 %v1419_v24, 0.0  ;;  %v1198_v47 = vadd.f32 %v1197_v25, %v3156_v53  ;;  %v1421_v49 = vadd.f32 %v1420_v26, %v3158_v0 }
 0x21d   : > { %v1201_v51 = vpop.f32.mrf.mxu0  ;;  %v1424_v52 = vpop.f32.mrf.mxu1 }
 0x21e   : > { %1751 = vst [vmem:[%s3164_s27 + $0x120] sm:$0xff] %v1599_v27  ;;  %1753 = vst [vmem:[%s3164_s27 + $0x130] sm:$0xff] %v1601_v28  ;;  %v1600_v48 = vmax.f32 %v1198_v47, 0.0  ;;  %v1602_v54 = vmax.f32 %v1421_v49, 0.0  ;;  %v1202_v55 = vadd.f32 %v1201_v51, %v3151_v50  ;;  %v1425_v43 = vadd.f32 %v1424_v52, %v3153_v45 }
 0x21f   : > { %v1203_v56 = vpop.f32.mrf.mxu0  ;;  %v1426_v57 = vpop.f32.mrf.mxu1 }
 0x220   : > { %1752 = vst [vmem:[%s3164_s27 + $0x128] sm:$0xff] %v1600_v48  ;;  %1754 = vst [vmem:[%s3164_s27 + $0x138] sm:$0xff] %v1602_v54  ;;  %v1603_v58 = vmax.f32 %v1202_v55, 0.0  ;;  %v1605_v46 = vmax.f32 %v1425_v43, 0.0  ;;  %v1204_v59 = vadd.f32 %v1203_v56, %v3156_v53  ;;  %v1427_v60 = vadd.f32 %v1426_v57, %v3158_v0 }
 0x221   : > { %v1205_v41 = vpop.f32.mrf.mxu0  ;;  %v1428_v61 = vpop.f32.mrf.mxu1 }
 0x222   : > { %1755 = vst [vmem:[%s3164_s27 + $0x140] sm:$0xff] %v1603_v58  ;;  %1757 = vst [vmem:[%s3164_s27 + $0x150] sm:$0xff] %v1605_v46  ;;  %v1604_v44 = vmax.f32 %v1204_v59, 0.0  ;;  %v1606_v62 = vmax.f32 %v1427_v60, 0.0  ;;  %v1206_v63 = vadd.f32 %v1205_v41, %v3151_v50  ;;  %v1429_v39 = vadd.f32 %v1428_v61, %v3153_v45 }
 0x223   : > { %v1207_v1 = vpop.f32.mrf.mxu0  ;;  %v1430_v2 = vpop.f32.mrf.mxu1 }
 0x224   : > { %1756 = vst [vmem:[%s3164_s27 + $0x148] sm:$0xff] %v1604_v44  ;;  %1758 = vst [vmem:[%s3164_s27 + $0x158] sm:$0xff] %v1606_v62  ;;  %v1607_v3 = vmax.f32 %v1206_v63, 0.0  ;;  %v1609_v42 = vmax.f32 %v1429_v39, 0.0  ;;  %v1208_v4 = vadd.f32 %v1207_v1, %v3156_v53  ;;  %v1431_v5 = vadd.f32 %v1430_v2, %v3158_v0 }
 0x225   : > { %v1211_v37 = vpop.f32.mrf.mxu0  ;;  %v1434_v6 = vpop.f32.mrf.mxu1 }
 0x226   : > { %1759 = vst [vmem:[%s3164_s27 + $0x160] sm:$0xff] %v1607_v3  ;;  %1761 = vst [vmem:[%s3164_s27 + $0x170] sm:$0xff] %v1609_v42  ;;  %v1608_v40 = vmax.f32 %v1208_v4, 0.0  ;;  %v1610_v7 = vmax.f32 %v1431_v5, 0.0  ;;  %v1212_v8 = vadd.f32 %v1211_v37, %v3151_v50  ;;  %v1435_v35 = vadd.f32 %v1434_v6, %v3153_v45 }
 0x227   : > { %v1213_v9 = vpop.f32.mrf.mxu0  ;;  %v1436_v10 = vpop.f32.mrf.mxu1 }
 0x228   : > { %1760 = vst [vmem:[%s3164_s27 + $0x168] sm:$0xff] %v1608_v40  ;;  %1762 = vst [vmem:[%s3164_s27 + $0x178] sm:$0xff] %v1610_v7  ;;  %v1611_v11 = vmax.f32 %v1212_v8, 0.0  ;;  %v1613_v38 = vmax.f32 %v1435_v35, 0.0  ;;  %v1214_v12 = vadd.f32 %v1213_v9, %v3156_v53  ;;  %v1437_v31 = vadd.f32 %v1436_v10, %v3158_v0 }
 0x229   : > { %v1215_v34 = vpop.f32.mrf.mxu0  ;;  %v1438_v29 = vpop.f32.mrf.mxu1 }
 0x22a   : > { %1763 = vst [vmem:[%s3164_s27 + $0x180] sm:$0xff] %v1611_v11  ;;  %1765 = vst [vmem:[%s3164_s27 + $0x190] sm:$0xff] %v1613_v38  ;;  %v1612_v13 = vmax.f32 %v1214_v12, 0.0  ;;  %v1614_v14 = vmax.f32 %v1437_v31, 0.0  ;;  %v1216_v16 = vadd.f32 %v1215_v34, %v3151_v50  ;;  %v1439_v17 = vadd.f32 %v1438_v29, %v3153_v45 }
 0x22b   : > { %v1217_v30 = vpop.f32.mrf.mxu0  ;;  %v1440_v32 = vpop.f32.mrf.mxu1 }
 0x22c   : > { %1764 = vst [vmem:[%s3164_s27 + $0x188] sm:$0xff] %v1612_v13  ;;  %1766 = vst [vmem:[%s3164_s27 + $0x198] sm:$0xff] %v1614_v14  ;;  %v1615_v33 = vmax.f32 %v1216_v16, 0.0  ;;  %v1617_v36 = vmax.f32 %v1439_v17, 0.0  ;;  %v1218_v15 = vadd.f32 %v1217_v30, %v3156_v53  ;;  %v1441_v18 = vadd.f32 %v1440_v32, %v3158_v0 }
 0x22d   : > { %v1221_v19 = vpop.f32.mrf.mxu0  ;;  %v1444_v20 = vpop.f32.mrf.mxu1 }
 0x22e   : > { %1767 = vst [vmem:[%s3164_s27 + $0x1a0] sm:$0xff] %v1615_v33  ;;  %1769 = vst [vmem:[%s3164_s27 + $0x1b0] sm:$0xff] %v1617_v36  ;;  %v1616_v21 = vmax.f32 %v1218_v15, 0.0  ;;  %v1618_v22 = vmax.f32 %v1441_v18, 0.0  ;;  %v1222_v23 = vadd.f32 %v1221_v19, %v3151_v50  ;;  %v1445_v24 = vadd.f32 %v1444_v20, %v3153_v45 }
 0x22f   : > { %v1223_v25 = vpop.f32.mrf.mxu0  ;;  %v1446_v26 = vpop.f32.mrf.mxu1 }
 0x230   : > { %1768 = vst [vmem:[%s3164_s27 + $0x1a8] sm:$0xff] %v1616_v21  ;;  %1770 = vst [vmem:[%s3164_s27 + $0x1b8] sm:$0xff] %v1618_v22  ;;  %v1619_v27 = vmax.f32 %v1222_v23, 0.0  ;;  %v1621_v28 = vmax.f32 %v1445_v24, 0.0  ;;  %v1224_v47 = vadd.f32 %v1223_v25, %v3156_v53  ;;  %v1447_v49 = vadd.f32 %v1446_v26, %v3158_v0 }
 0x231   : > { %v1225_v51 = vpop.f32.mrf.mxu0  ;;  %v1448_v52 = vpop.f32.mrf.mxu1 }
 0x232   : > { %1771 = vst [vmem:[%s3164_s27 + $0x1c0] sm:$0xff] %v1619_v27  ;;  %1773 = vst [vmem:[%s3164_s27 + $0x1d0] sm:$0xff] %v1621_v28  ;;  %v1620_v48 = vmax.f32 %v1224_v47, 0.0  ;;  %v1622_v54 = vmax.f32 %v1447_v49, 0.0  ;;  %v1226_v55 = vadd.f32 %v1225_v51, %v3151_v50  ;;  %v1449_v43 = vadd.f32 %v1448_v52, %v3153_v45 }
 0x233   : > { %v1227_v56 = vpop.f32.mrf.mxu0  ;;  %v1450_v57 = vpop.f32.mrf.mxu1 }
 0x234   : > { %1772 = vst [vmem:[%s3164_s27 + $0x1c8] sm:$0xff] %v1620_v48  ;;  %1774 = vst [vmem:[%s3164_s27 + $0x1d8] sm:$0xff] %v1622_v54  ;;  %v1623_v58 = vmax.f32 %v1226_v55, 0.0  ;;  %v1625_v46 = vmax.f32 %v1449_v43, 0.0  ;;  %v1228_v59 = vadd.f32 %v1227_v56, %v3156_v53  ;;  %v1451_v60 = vadd.f32 %v1450_v57, %v3158_v0 }
 0x235   : > { %v1231_v41 = vpop.f32.mrf.mxu0  ;;  %v1454_v61 = vpop.f32.mrf.mxu1 }
 0x236   : > { %1775 = vst [vmem:[%s3164_s27 + $0x1e0] sm:$0xff] %v1623_v58  ;;  %1777 = vst [vmem:[%s3164_s27 + $0x1f0] sm:$0xff] %v1625_v46  ;;  %v1624_v44 = vmax.f32 %v1228_v59, 0.0  ;;  %v1626_v62 = vmax.f32 %v1451_v60, 0.0  ;;  %v1232_v63 = vadd.f32 %v1231_v41, %v3151_v50  ;;  %v1455_v39 = vadd.f32 %v1454_v61, %v3153_v45 }
 0x237   : > { %v1233_v1 = vpop.f32.mrf.mxu0  ;;  %v1456_v2 = vpop.f32.mrf.mxu1 }
 0x238   : > { %1776 = vst [vmem:[%s3164_s27 + $0x1e8] sm:$0xff] %v1624_v44  ;;  %1778 = vst [vmem:[%s3164_s27 + $0x1f8] sm:$0xff] %v1626_v62  ;;  %v1627_v3 = vmax.f32 %v1232_v63, 0.0  ;;  %v1629_v42 = vmax.f32 %v1455_v39, 0.0  ;;  %v1234_v4 = vadd.f32 %v1233_v1, %v3156_v53  ;;  %v1457_v5 = vadd.f32 %v1456_v2, %v3158_v0 }
 0x239   : > { %v1235_v37 = vpop.f32.mrf.mxu0  ;;  %v1458_v6 = vpop.f32.mrf.mxu1 }
 0x23a   : > { %1779 = vst [vmem:[%s3164_s27 + $0x200] sm:$0xff] %v1627_v3  ;;  %1781 = vst [vmem:[%s3164_s27 + $0x210] sm:$0xff] %v1629_v42  ;;  %v1628_v40 = vmax.f32 %v1234_v4, 0.0  ;;  %v1630_v7 = vmax.f32 %v1457_v5, 0.0  ;;  %v1236_v8 = vadd.f32 %v1235_v37, %v3151_v50  ;;  %v1459_v35 = vadd.f32 %v1458_v6, %v3153_v45 }
 0x23b   : > { %v1237_v9 = vpop.f32.mrf.mxu0  ;;  %v1460_v10 = vpop.f32.mrf.mxu1 }
 0x23c   : > { %1780 = vst [vmem:[%s3164_s27 + $0x208] sm:$0xff] %v1628_v40  ;;  %1782 = vst [vmem:[%s3164_s27 + $0x218] sm:$0xff] %v1630_v7  ;;  %v1631_v11 = vmax.f32 %v1236_v8, 0.0  ;;  %v1633_v38 = vmax.f32 %v1459_v35, 0.0  ;;  %v1238_v12 = vadd.f32 %v1237_v9, %v3156_v53  ;;  %v1461_v31 = vadd.f32 %v1460_v10, %v3158_v0 }
 0x23d   : > { %v1241_v34 = vpop.f32.mrf.mxu0  ;;  %v1464_v29 = vpop.f32.mrf.mxu1 }
 0x23e   : > { %1783 = vst [vmem:[%s3164_s27 + $0x220] sm:$0xff] %v1631_v11  ;;  %1785 = vst [vmem:[%s3164_s27 + $0x230] sm:$0xff] %v1633_v38  ;;  %v1632_v13 = vmax.f32 %v1238_v12, 0.0  ;;  %v1634_v14 = vmax.f32 %v1461_v31, 0.0  ;;  %v1242_v16 = vadd.f32 %v1241_v34, %v3151_v50  ;;  %v1465_v17 = vadd.f32 %v1464_v29, %v3153_v45 }
 0x23f   : > { %v1243_v30 = vpop.f32.mrf.mxu0  ;;  %v1466_v32 = vpop.f32.mrf.mxu1 }
 0x240   : > { %1784 = vst [vmem:[%s3164_s27 + $0x228] sm:$0xff] %v1632_v13  ;;  %1786 = vst [vmem:[%s3164_s27 + $0x238] sm:$0xff] %v1634_v14  ;;  %v1635_v33 = vmax.f32 %v1242_v16, 0.0  ;;  %v1637_v36 = vmax.f32 %v1465_v17, 0.0  ;;  %v1244_v15 = vadd.f32 %v1243_v30, %v3156_v53  ;;  %v1467_v18 = vadd.f32 %v1466_v32, %v3158_v0 }
 0x241   : > { %v1245_v19 = vpop.f32.mrf.mxu0  ;;  %v1468_v20 = vpop.f32.mrf.mxu1 }
 0x242   : > { %1787 = vst [vmem:[%s3164_s27 + $0x240] sm:$0xff] %v1635_v33  ;;  %1789 = vst [vmem:[%s3164_s27 + $0x250] sm:$0xff] %v1637_v36  ;;  %v1636_v21 = vmax.f32 %v1244_v15, 0.0  ;;  %v1638_v22 = vmax.f32 %v1467_v18, 0.0  ;;  %v1246_v23 = vadd.f32 %v1245_v19, %v3151_v50  ;;  %v1469_v24 = vadd.f32 %v1468_v20, %v3153_v45 }
 0x243   : > { %v1247_v25 = vpop.f32.mrf.mxu0  ;;  %v1470_v26 = vpop.f32.mrf.mxu1 }
 0x244   : > { %1788 = vst [vmem:[%s3164_s27 + $0x248] sm:$0xff] %v1636_v21  ;;  %1790 = vst [vmem:[%s3164_s27 + $0x258] sm:$0xff] %v1638_v22  ;;  %v1639_v27 = vmax.f32 %v1246_v23, 0.0  ;;  %v1641_v28 = vmax.f32 %v1469_v24, 0.0  ;;  %v1248_v47 = vadd.f32 %v1247_v25, %v3156_v53  ;;  %v1471_v49 = vadd.f32 %v1470_v26, %v3158_v0 }
 0x245   : > { %v1251_v51 = vpop.f32.mrf.mxu0  ;;  %v1474_v52 = vpop.f32.mrf.mxu1 }
 0x246   : > { %1791 = vst [vmem:[%s3164_s27 + $0x260] sm:$0xff] %v1639_v27  ;;  %1793 = vst [vmem:[%s3164_s27 + $0x270] sm:$0xff] %v1641_v28  ;;  %v1640_v48 = vmax.f32 %v1248_v47, 0.0  ;;  %v1642_v54 = vmax.f32 %v1471_v49, 0.0  ;;  %v1252_v55 = vadd.f32 %v1251_v51, %v3151_v50  ;;  %v1475_v43 = vadd.f32 %v1474_v52, %v3153_v45 }
 0x247   : > { %v1253_v56 = vpop.f32.mrf.mxu0  ;;  %v1476_v57 = vpop.f32.mrf.mxu1 }
 0x248   : > { %1792 = vst [vmem:[%s3164_s27 + $0x268] sm:$0xff] %v1640_v48  ;;  %1794 = vst [vmem:[%s3164_s27 + $0x278] sm:$0xff] %v1642_v54  ;;  %v1643_v58 = vmax.f32 %v1252_v55, 0.0  ;;  %v1645_v46 = vmax.f32 %v1475_v43, 0.0  ;;  %v1254_v59 = vadd.f32 %v1253_v56, %v3156_v53  ;;  %v1477_v60 = vadd.f32 %v1476_v57, %v3158_v0 }
 0x249   : > { %v1255_v41 = vpop.f32.mrf.mxu0  ;;  %v1478_v61 = vpop.f32.mrf.mxu1 }
 0x24a   : > { %1795 = vst [vmem:[%s3164_s27 + $0x280] sm:$0xff] %v1643_v58  ;;  %1797 = vst [vmem:[%s3164_s27 + $0x290] sm:$0xff] %v1645_v46  ;;  %v1644_v44 = vmax.f32 %v1254_v59, 0.0  ;;  %v1646_v62 = vmax.f32 %v1477_v60, 0.0  ;;  %v1256_v63 = vadd.f32 %v1255_v41, %v3151_v50  ;;  %v1479_v39 = vadd.f32 %v1478_v61, %v3153_v45 }
 0x24b   : > { %v1257_v1 = vpop.f32.mrf.mxu0  ;;  %v1480_v2 = vpop.f32.mrf.mxu1 }
 0x24c   : > { %1796 = vst [vmem:[%s3164_s27 + $0x288] sm:$0xff] %v1644_v44  ;;  %1798 = vst [vmem:[%s3164_s27 + $0x298] sm:$0xff] %v1646_v62  ;;  %v1647_v3 = vmax.f32 %v1256_v63, 0.0  ;;  %v1649_v42 = vmax.f32 %v1479_v39, 0.0  ;;  %v1258_v4 = vadd.f32 %v1257_v1, %v3156_v53  ;;  %v1481_v5 = vadd.f32 %v1480_v2, %v3158_v0 }
 0x24d   : > { %v1261_v37 = vpop.f32.mrf.mxu0  ;;  %v1484_v6 = vpop.f32.mrf.mxu1 }
 0x24e   : > { %1799 = vst [vmem:[%s3164_s27 + $0x2a0] sm:$0xff] %v1647_v3  ;;  %1801 = vst [vmem:[%s3164_s27 + $0x2b0] sm:$0xff] %v1649_v42  ;;  %v1648_v40 = vmax.f32 %v1258_v4, 0.0  ;;  %v1650_v7 = vmax.f32 %v1481_v5, 0.0  ;;  %v1262_v8 = vadd.f32 %v1261_v37, %v3151_v50  ;;  %v1485_v35 = vadd.f32 %v1484_v6, %v3153_v45 }
 0x24f   : > { %v1263_v9 = vpop.f32.mrf.mxu0  ;;  %v1486_v10 = vpop.f32.mrf.mxu1 }
 0x250   : > { %1800 = vst [vmem:[%s3164_s27 + $0x2a8] sm:$0xff] %v1648_v40  ;;  %1802 = vst [vmem:[%s3164_s27 + $0x2b8] sm:$0xff] %v1650_v7  ;;  %v1651_v11 = vmax.f32 %v1262_v8, 0.0  ;;  %v1653_v38 = vmax.f32 %v1485_v35, 0.0  ;;  %v1264_v12 = vadd.f32 %v1263_v9, %v3156_v53  ;;  %v1487_v31 = vadd.f32 %v1486_v10, %v3158_v0 }
 0x251   : > { %v1265_v34 = vpop.f32.mrf.mxu0  ;;  %v1488_v29 = vpop.f32.mrf.mxu1 }
 0x252   : > { %1803 = vst [vmem:[%s3164_s27 + $0x2c0] sm:$0xff] %v1651_v11  ;;  %1805 = vst [vmem:[%s3164_s27 + $0x2d0] sm:$0xff] %v1653_v38  ;;  %v1652_v13 = vmax.f32 %v1264_v12, 0.0  ;;  %v1654_v14 = vmax.f32 %v1487_v31, 0.0  ;;  %v1266_v16 = vadd.f32 %v1265_v34, %v3151_v50  ;;  %v1489_v17 = vadd.f32 %v1488_v29, %v3153_v45 }
 0x253   : > { %v1267_v30 = vpop.f32.mrf.mxu0  ;;  %v1490_v32 = vpop.f32.mrf.mxu1 }
 0x254   : > { %1804 = vst [vmem:[%s3164_s27 + $0x2c8] sm:$0xff] %v1652_v13  ;;  %1806 = vst [vmem:[%s3164_s27 + $0x2d8] sm:$0xff] %v1654_v14  ;;  %v1655_v33 = vmax.f32 %v1266_v16, 0.0  ;;  %v1657_v36 = vmax.f32 %v1489_v17, 0.0  ;;  %v1268_v15 = vadd.f32 %v1267_v30, %v3156_v53  ;;  %v1491_v18 = vadd.f32 %v1490_v32, %v3158_v0 }
 0x255   : > { %v1271_v19 = vpop.f32.mrf.mxu0  ;;  %v1494_v20 = vpop.f32.mrf.mxu1 }
 0x256   : > { %1807 = vst [vmem:[%s3164_s27 + $0x2e0] sm:$0xff] %v1655_v33  ;;  %1809 = vst [vmem:[%s3164_s27 + $0x2f0] sm:$0xff] %v1657_v36  ;;  %v1656_v21 = vmax.f32 %v1268_v15, 0.0  ;;  %v1658_v22 = vmax.f32 %v1491_v18, 0.0  ;;  %v1272_v23 = vadd.f32 %v1271_v19, %v3151_v50  ;;  %v1495_v24 = vadd.f32 %v1494_v20, %v3153_v45 }
 0x257   : > { %v1273_v25 = vpop.f32.mrf.mxu0  ;;  %v1496_v26 = vpop.f32.mrf.mxu1 }
 0x258   : > { %1808 = vst [vmem:[%s3164_s27 + $0x2e8] sm:$0xff] %v1656_v21  ;;  %1810 = vst [vmem:[%s3164_s27 + $0x2f8] sm:$0xff] %v1658_v22  ;;  %v1659_v27 = vmax.f32 %v1272_v23, 0.0  ;;  %v1661_v28 = vmax.f32 %v1495_v24, 0.0  ;;  %v1274_v47 = vadd.f32 %v1273_v25, %v3156_v53  ;;  %v1497_v49 = vadd.f32 %v1496_v26, %v3158_v0 }
 0x259   : > { %v1275_v51 = vpop.f32.mrf.mxu0  ;;  %v1498_v52 = vpop.f32.mrf.mxu1 }
 0x25a   : > { %1811 = vst [vmem:[%s3164_s27 + $0x300] sm:$0xff] %v1659_v27  ;;  %1813 = vst [vmem:[%s3164_s27 + $0x310] sm:$0xff] %v1661_v28  ;;  %v1660_v48 = vmax.f32 %v1274_v47, 0.0  ;;  %v1662_v54 = vmax.f32 %v1497_v49, 0.0  ;;  %v1276_v55 = vadd.f32 %v1275_v51, %v3151_v50  ;;  %v1499_v43 = vadd.f32 %v1498_v52, %v3153_v45 }
 0x25b   : > { %v1277_v56 = vpop.f32.mrf.mxu0  ;;  %v1500_v57 = vpop.f32.mrf.mxu1 }
 0x25c   : > { %1812 = vst [vmem:[%s3164_s27 + $0x308] sm:$0xff] %v1660_v48  ;;  %1814 = vst [vmem:[%s3164_s27 + $0x318] sm:$0xff] %v1662_v54  ;;  %v1663_v58 = vmax.f32 %v1276_v55, 0.0  ;;  %v1665_v46 = vmax.f32 %v1499_v43, 0.0  ;;  %v1278_v59 = vadd.f32 %v1277_v56, %v3156_v53  ;;  %v1501_v60 = vadd.f32 %v1500_v57, %v3158_v0 }
 0x25d   : > { %v1281_v41 = vpop.f32.mrf.mxu0  ;;  %v1504_v61 = vpop.f32.mrf.mxu1 }
 0x25e   : > { %1815 = vst [vmem:[%s3164_s27 + $0x320] sm:$0xff] %v1663_v58  ;;  %1817 = vst [vmem:[%s3164_s27 + $0x330] sm:$0xff] %v1665_v46  ;;  %v1664_v44 = vmax.f32 %v1278_v59, 0.0  ;;  %v1666_v62 = vmax.f32 %v1501_v60, 0.0  ;;  %v1282_v63 = vadd.f32 %v1281_v41, %v3151_v50  ;;  %v1505_v39 = vadd.f32 %v1504_v61, %v3153_v45 }
 0x25f   : > { %v1283_v1 = vpop.f32.mrf.mxu0  ;;  %v1506_v2 = vpop.f32.mrf.mxu1 }
 0x260   : > { %1816 = vst [vmem:[%s3164_s27 + $0x328] sm:$0xff] %v1664_v44  ;;  %1818 = vst [vmem:[%s3164_s27 + $0x338] sm:$0xff] %v1666_v62  ;;  %v1667_v3 = vmax.f32 %v1282_v63, 0.0  ;;  %v1669_v42 = vmax.f32 %v1505_v39, 0.0  ;;  %v1284_v4 = vadd.f32 %v1283_v1, %v3156_v53  ;;  %v1507_v5 = vadd.f32 %v1506_v2, %v3158_v0 }
 0x261   : > { %v1285_v37 = vpop.f32.mrf.mxu0  ;;  %v1508_v6 = vpop.f32.mrf.mxu1 }
 0x262   : > { %1819 = vst [vmem:[%s3164_s27 + $0x340] sm:$0xff] %v1667_v3  ;;  %1821 = vst [vmem:[%s3164_s27 + $0x350] sm:$0xff] %v1669_v42  ;;  %v1668_v40 = vmax.f32 %v1284_v4, 0.0  ;;  %v1670_v7 = vmax.f32 %v1507_v5, 0.0  ;;  %v1286_v8 = vadd.f32 %v1285_v37, %v3151_v50  ;;  %v1509_v35 = vadd.f32 %v1508_v6, %v3153_v45 }
 0x263   : > { %v1287_v9 = vpop.f32.mrf.mxu0  ;;  %v1510_v10 = vpop.f32.mrf.mxu1 }
 0x264   : > { %1820 = vst [vmem:[%s3164_s27 + $0x348] sm:$0xff] %v1668_v40  ;;  %1822 = vst [vmem:[%s3164_s27 + $0x358] sm:$0xff] %v1670_v7  ;;  %v1671_v11 = vmax.f32 %v1286_v8, 0.0  ;;  %v1673_v38 = vmax.f32 %v1509_v35, 0.0  ;;  %v1288_v12 = vadd.f32 %v1287_v9, %v3156_v53  ;;  %v1511_v31 = vadd.f32 %v1510_v10, %v3158_v0 }
 0x265   : > { %v1291_v34 = vpop.f32.mrf.mxu0  ;;  %v1514_v29 = vpop.f32.mrf.mxu1 }
 0x266   : > { %1823 = vst [vmem:[%s3164_s27 + $0x360] sm:$0xff] %v1671_v11  ;;  %1825 = vst [vmem:[%s3164_s27 + $0x370] sm:$0xff] %v1673_v38  ;;  %v1672_v13 = vmax.f32 %v1288_v12, 0.0  ;;  %v1674_v14 = vmax.f32 %v1511_v31, 0.0  ;;  %v1292_v16 = vadd.f32 %v1291_v34, %v3151_v50  ;;  %v1515_v17 = vadd.f32 %v1514_v29, %v3153_v45 }
 0x267   : > { %v1293_v30 = vpop.f32.mrf.mxu0  ;;  %v1516_v32 = vpop.f32.mrf.mxu1 }
 0x268   : > { %1824 = vst [vmem:[%s3164_s27 + $0x368] sm:$0xff] %v1672_v13  ;;  %1826 = vst [vmem:[%s3164_s27 + $0x378] sm:$0xff] %v1674_v14  ;;  %v1675_v33 = vmax.f32 %v1292_v16, 0.0  ;;  %v1677_v36 = vmax.f32 %v1515_v17, 0.0  ;;  %v1294_v15 = vadd.f32 %v1293_v30, %v3156_v53  ;;  %v1517_v18 = vadd.f32 %v1516_v32, %v3158_v0 }
 0x269   : > { %v1295_v19 = vpop.f32.mrf.mxu0  ;;  %v1518_v20 = vpop.f32.mrf.mxu1 }
 0x26a   : > { %1827 = vst [vmem:[%s3164_s27 + $0x380] sm:$0xff] %v1675_v33  ;;  %1829 = vst [vmem:[%s3164_s27 + $0x390] sm:$0xff] %v1677_v36  ;;  %v1676_v21 = vmax.f32 %v1294_v15, 0.0  ;;  %v1678_v22 = vmax.f32 %v1517_v18, 0.0  ;;  %v1296_v23 = vadd.f32 %v1295_v19, %v3151_v50  ;;  %v1519_v24 = vadd.f32 %v1518_v20, %v3153_v45 }
 0x26b   : > { %v1297_v25 = vpop.f32.mrf.mxu0  ;;  %v1520_v26 = vpop.f32.mrf.mxu1 }
 0x26c   : > { %1828 = vst [vmem:[%s3164_s27 + $0x388] sm:$0xff] %v1676_v21  ;;  %1830 = vst [vmem:[%s3164_s27 + $0x398] sm:$0xff] %v1678_v22  ;;  %v1679_v27 = vmax.f32 %v1296_v23, 0.0  ;;  %v1681_v28 = vmax.f32 %v1519_v24, 0.0  ;;  %v1298_v47 = vadd.f32 %v1297_v25, %v3156_v53  ;;  %v1521_v49 = vadd.f32 %v1520_v26, %v3158_v0 }
 0x26d   : > { %v1301_v51 = vpop.f32.mrf.mxu0  ;;  %v1524_v52 = vpop.f32.mrf.mxu1 }
 0x26e   : > { %1831 = vst [vmem:[%s3164_s27 + $0x3a0] sm:$0xff] %v1679_v27  ;;  %1833 = vst [vmem:[%s3164_s27 + $0x3b0] sm:$0xff] %v1681_v28  ;;  %v1680_v48 = vmax.f32 %v1298_v47, 0.0  ;;  %v1682_v54 = vmax.f32 %v1521_v49, 0.0  ;;  %v1302_v55 = vadd.f32 %v1301_v51, %v3151_v50  ;;  %v1525_v43 = vadd.f32 %v1524_v52, %v3153_v45 }
 0x26f   : > { %v1303_v56 = vpop.f32.mrf.mxu0  ;;  %v1526_v57 = vpop.f32.mrf.mxu1 }
 0x270   : > { %1832 = vst [vmem:[%s3164_s27 + $0x3a8] sm:$0xff] %v1680_v48  ;;  %1834 = vst [vmem:[%s3164_s27 + $0x3b8] sm:$0xff] %v1682_v54  ;;  %v1683_v58 = vmax.f32 %v1302_v55, 0.0  ;;  %v1685_v46 = vmax.f32 %v1525_v43, 0.0  ;;  %v1304_v59 = vadd.f32 %v1303_v56, %v3156_v53  ;;  %v1527_v60 = vadd.f32 %v1526_v57, %v3158_v0 }
 0x271   : > { %v1305_v41 = vpop.f32.mrf.mxu0  ;;  %v1528_v61 = vpop.f32.mrf.mxu1 }
 0x272   : > { %1835 = vst [vmem:[%s3164_s27 + $0x3c0] sm:$0xff] %v1683_v58  ;;  %1837 = vst [vmem:[%s3164_s27 + $0x3d0] sm:$0xff] %v1685_v46  ;;  %v1684_v44 = vmax.f32 %v1304_v59, 0.0  ;;  %v1686_v62 = vmax.f32 %v1527_v60, 0.0  ;;  %v1306_v63 = vadd.f32 %v1305_v41, %v3151_v50  ;;  %v1529_v39 = vadd.f32 %v1528_v61, %v3153_v45 }
 0x273   : > { %v1307_v1 = vpop.f32.mrf.mxu0  ;;  %v1530_v2 = vpop.f32.mrf.mxu1 }
 0x274   : > { %1836 = vst [vmem:[%s3164_s27 + $0x3c8] sm:$0xff] %v1684_v44  ;;  %1838 = vst [vmem:[%s3164_s27 + $0x3d8] sm:$0xff] %v1686_v62  ;;  %v1687_v3 = vmax.f32 %v1306_v63, 0.0  ;;  %v1689_v42 = vmax.f32 %v1529_v39, 0.0  ;;  %v1308_v4 = vadd.f32 %v1307_v1, %v3156_v53  ;;  %v1531_v5 = vadd.f32 %v1530_v2, %v3158_v0 }
 0x275   : > { %v1311_v37 = vpop.f32.mrf.mxu0  ;;  %v1534_v6 = vpop.f32.mrf.mxu1 }
 0x276   : > { %1839 = vst [vmem:[%s3164_s27 + $0x3e0] sm:$0xff] %v1687_v3  ;;  %1841 = vst [vmem:[%s3164_s27 + $0x3f0] sm:$0xff] %v1689_v42  ;;  %v1688_v40 = vmax.f32 %v1308_v4, 0.0  ;;  %v1690_v7 = vmax.f32 %v1531_v5, 0.0  ;;  %v1312_v8 = vadd.f32 %v1311_v37, %v3151_v50  ;;  %v1535_v35 = vadd.f32 %v1534_v6, %v3153_v45 }
 0x277   : > { %v1313_v9 = vpop.f32.mrf.mxu0  ;;  %v1536_v10 = vpop.f32.mrf.mxu1 }
 0x278   : > { %1840 = vst [vmem:[%s3164_s27 + $0x3e8] sm:$0xff] %v1688_v40  ;;  %1842 = vst [vmem:[%s3164_s27 + $0x3f8] sm:$0xff] %v1690_v7  ;;  %v1691_v11 = vmax.f32 %v1312_v8, 0.0  ;;  %v1693_v38 = vmax.f32 %v1535_v35, 0.0  ;;  %v1314_v12 = vadd.f32 %v1313_v9, %v3156_v53  ;;  %v1537_v31 = vadd.f32 %v1536_v10, %v3158_v0 }
 0x279   : > { %v1315_v34 = vpop.f32.mrf.mxu0  ;;  %v1538_v29 = vpop.f32.mrf.mxu1 }
 0x27a   : > { %1843 = vst [vmem:[%s3164_s27 + $0x400] sm:$0xff] %v1691_v11  ;;  %1845 = vst [vmem:[%s3164_s27 + $0x410] sm:$0xff] %v1693_v38  ;;  %v1692_v13 = vmax.f32 %v1314_v12, 0.0  ;;  %v1694_v14 = vmax.f32 %v1537_v31, 0.0  ;;  %v1316_v16 = vadd.f32 %v1315_v34, %v3151_v50  ;;  %v1539_v17 = vadd.f32 %v1538_v29, %v3153_v45 }
 0x27b   : > { %v1317_v30 = vpop.f32.mrf.mxu0  ;;  %v1540_v32 = vpop.f32.mrf.mxu1 }
 0x27c   : > { %1844 = vst [vmem:[%s3164_s27 + $0x408] sm:$0xff] %v1692_v13  ;;  %1846 = vst [vmem:[%s3164_s27 + $0x418] sm:$0xff] %v1694_v14  ;;  %v1695_v33 = vmax.f32 %v1316_v16, 0.0  ;;  %v1697_v36 = vmax.f32 %v1539_v17, 0.0  ;;  %v1318_v15 = vadd.f32 %v1317_v30, %v3156_v53  ;;  %v1541_v18 = vadd.f32 %v1540_v32, %v3158_v0 }
 0x27d   : > { %v1321_v19 = vpop.f32.mrf.mxu0  ;;  %v1544_v20 = vpop.f32.mrf.mxu1 }
 0x27e   : > { %1847 = vst [vmem:[%s3164_s27 + $0x420] sm:$0xff] %v1695_v33  ;;  %1849 = vst [vmem:[%s3164_s27 + $0x430] sm:$0xff] %v1697_v36  ;;  %v1696_v21 = vmax.f32 %v1318_v15, 0.0  ;;  %v1698_v22 = vmax.f32 %v1541_v18, 0.0  ;;  %v1322_v23 = vadd.f32 %v1321_v19, %v3151_v50  ;;  %v1545_v24 = vadd.f32 %v1544_v20, %v3153_v45 }
 0x27f   : > { %v1323_v25 = vpop.f32.mrf.mxu0  ;;  %v1546_v26 = vpop.f32.mrf.mxu1 }
 0x280   : > { %1848 = vst [vmem:[%s3164_s27 + $0x428] sm:$0xff] %v1696_v21  ;;  %1850 = vst [vmem:[%s3164_s27 + $0x438] sm:$0xff] %v1698_v22  ;;  %v1699_v27 = vmax.f32 %v1322_v23, 0.0  ;;  %v1701_v28 = vmax.f32 %v1545_v24, 0.0  ;;  %v1324_v47 = vadd.f32 %v1323_v25, %v3156_v53  ;;  %v1547_v49 = vadd.f32 %v1546_v26, %v3158_v0 }
 0x281   : > { %v1325_v51 = vpop.f32.mrf.mxu0  ;;  %v1548_v52 = vpop.f32.mrf.mxu1 }
 0x282   : > { %1851 = vst [vmem:[%s3164_s27 + $0x440] sm:$0xff] %v1699_v27  ;;  %1853 = vst [vmem:[%s3164_s27 + $0x450] sm:$0xff] %v1701_v28  ;;  %v1700_v48 = vmax.f32 %v1324_v47, 0.0  ;;  %v1702_v54 = vmax.f32 %v1547_v49, 0.0  ;;  %v1326_v55 = vadd.f32 %v1325_v51, %v3151_v50  ;;  %v1549_v43 = vadd.f32 %v1548_v52, %v3153_v45 }
 0x283   : > { %v1327_v56 = vpop.f32.mrf.mxu0  ;;  %v1550_v57 = vpop.f32.mrf.mxu1 }
 0x284   : > { %1852 = vst [vmem:[%s3164_s27 + $0x448] sm:$0xff] %v1700_v48  ;;  %1854 = vst [vmem:[%s3164_s27 + $0x458] sm:$0xff] %v1702_v54  ;;  %v1703_v58 = vmax.f32 %v1326_v55, 0.0  ;;  %v1705_v46 = vmax.f32 %v1549_v43, 0.0  ;;  %v1328_v59 = vadd.f32 %v1327_v56, %v3156_v53  ;;  %v1551_v60 = vadd.f32 %v1550_v57, %v3158_v0 }
 0x285   : > { %v1331_v41 = vpop.f32.mrf.mxu0  ;;  %v1554_v61 = vpop.f32.mrf.mxu1 }
 0x286   : > { %1855 = vst [vmem:[%s3164_s27 + $0x460] sm:$0xff] %v1703_v58  ;;  %1857 = vst [vmem:[%s3164_s27 + $0x470] sm:$0xff] %v1705_v46  ;;  %v1704_v44 = vmax.f32 %v1328_v59, 0.0  ;;  %v1706_v62 = vmax.f32 %v1551_v60, 0.0  ;;  %v1332_v63 = vadd.f32 %v1331_v41, %v3151_v50  ;;  %v1555_v39 = vadd.f32 %v1554_v61, %v3153_v45 }
 0x287   : > { %v1333_v1 = vpop.f32.mrf.mxu0  ;;  %v1556_v2 = vpop.f32.mrf.mxu1 }
 0x288   : > { %1856 = vst [vmem:[%s3164_s27 + $0x468] sm:$0xff] %v1704_v44  ;;  %1858 = vst [vmem:[%s3164_s27 + $0x478] sm:$0xff] %v1706_v62  ;;  %v1707_v3 = vmax.f32 %v1332_v63, 0.0  ;;  %v1709_v42 = vmax.f32 %v1555_v39, 0.0  ;;  %v1334_v4 = vadd.f32 %v1333_v1, %v3156_v53  ;;  %v1557_v5 = vadd.f32 %v1556_v2, %v3158_v0 }
 0x289   : > { %v1335_v37 = vpop.f32.mrf.mxu0  ;;  %v1558_v6 = vpop.f32.mrf.mxu1 }
 0x28a   : > { %1859 = vst [vmem:[%s3164_s27 + $0x480] sm:$0xff] %v1707_v3  ;;  %1861 = vst [vmem:[%s3164_s27 + $0x490] sm:$0xff] %v1709_v42  ;;  %v1708_v40 = vmax.f32 %v1334_v4, 0.0  ;;  %v1710_v7 = vmax.f32 %v1557_v5, 0.0  ;;  %v1336_v8 = vadd.f32 %v1335_v37, %v3151_v50  ;;  %v1559_v35 = vadd.f32 %v1558_v6, %v3153_v45 }
 0x28b   : > { %v1337_v9 = vpop.f32.mrf.mxu0  ;;  %v1560_v10 = vpop.f32.mrf.mxu1 }
 0x28c   : > { %1860 = vst [vmem:[%s3164_s27 + $0x488] sm:$0xff] %v1708_v40  ;;  %1862 = vst [vmem:[%s3164_s27 + $0x498] sm:$0xff] %v1710_v7  ;;  %v1711_v11 = vmax.f32 %v1336_v8, 0.0  ;;  %v1713_v38 = vmax.f32 %v1559_v35, 0.0  ;;  %v1338_v12 = vadd.f32 %v1337_v9, %v3156_v53  ;;  %v1561_v31 = vadd.f32 %v1560_v10, %v3158_v0 }
 0x28e   : > { %1863 = vst [vmem:[%s3164_s27 + $0x4a0] sm:$0xff] %v1711_v11  ;;  %1865 = vst [vmem:[%s3164_s27 + $0x4b0] sm:$0xff] %v1713_v38  ;;  %v1712_v50 = vmax.f32 %v1338_v12, 0.0  ;;  %v1714_v45 = vmax.f32 %v1561_v31, 0.0 }
 0x290   : > { %1864 = vst [vmem:[%s3164_s27 + $0x4a8] sm:$0xff] %v1712_v50  ;;  %1866 = vst [vmem:[%s3164_s27 + $0x4b8] sm:$0xff] %v1714_v45 }
 0x291   : > { %2753 = shalt.err (!%p2750_p8)
}
 0x292   : > { %s2754_s10 = scalar_lea.hbm %s3467_s30, 19456  ;;  %s2758_s6 = scalar_lea.hbm %s3524_s3, 38912 }
 0x293   : > { %p2755_p12 = scmp.ne.s32.totalorder %s3467_s30, %s2754_s10  ;;  %p2759_p1 = scmp.lt.s32.totalorder %s3467_s30, %s3524_s3 }
 0x294   : > { %p2760_p5 = scmp.lt.s32.totalorder %s2758_s6, %s2754_s10 }
 0x295   : > { %p2756_p13 = pnand %p2755_p12, %p3541_p2 }
 0x296   : > { %p2761_p7 = por %p2760_p5, %p2759_p1 }
 0x297   : > { %p2757_p6 = pneg %p2756_p13 }
 0x299   : > { %p2762_p11 = pnand %p2761_p7, %p2757_p6 }
 0x29b   : > { %2765 = shalt.err (!%p2762_p11)
}
 0x29c   : > { %s2833_s27 = smov 512   ;;  %s2834_s8 = smov 1024  }
 0x29d   : > { %s2835_s15 = smov 32  }
 0x29e   : > { %2339 = dma.vmem_to_hbm [thread:$0]  (%p3541_p2), %s3469_s21, 19456, %s3467_s30, %s1868_s4, %s2833_s27, %s2834_s8, %s2835_s15  }
 0x29f PF: > { %s1899_s28 = sand.u32 1, %s2804_s12   ;;  %p3542_p9 = scmp.ne.s32.totalorder %s3534_s26, 0 }
 0x2a0   : > { %p3543_p10 = scmp.ge.s32.totalorder %s2824_s17, 2  ;;  %s1900_s7 = scalar_lea.sflag [#allocation5], %s1899_s28 }
 0x2a2   : > { %p2353_p0 = pnand %p3543_p10, %p3542_p9 }
 0x2a4   : > { %p2354_p4 = pneg %p2353_p0 }
 0x2a6   : > { %2799 = dma.done.wait (%p2354_p4), %s1900_s7, 19456  }
 0x2a7   : > { %2801 = vsyncadd (%p2354_p4), %s1900_s7, 4294947840  ;;  %s20_s17 = sadd.s32 1, %s2824_s17   ;;  %s3544_s12 = smov %s2808_s13 }
 0x2a8   : > { %p17_p3 = scmp.ge.s32.totalorder %s20_s17, 4   ;;  %s3545_s13 = smov %s2812_s14 }
 0x2a9   : > { %s3546_s14 = smov %s2907_s24  ;;  %s3547_s15 = smov %s2820_s16 }
 0x2aa   : > { %s3548_s16 = smov %s3550_s18  ;;  %19 = sbr.rel (!%p17_p3) target bundleno = 7 (0x7), region = 98 }
 0x2af   :  { %1905 = vsyncpa [#allocation4], 1 }
 0x2b0   :  { %1907 = vsyncpa [#allocation4 + $0x1], 1 }
 0x2b1   :  { %1908 = vsyncpa [#allocation7], 1 }
 0x2b2   :  { %1910 = vsyncpa [#allocation7 + $0x1], 1 }
 0x2b3   :  { %1911 = vsyncpa [#allocation5], 1 }
 0x2b4   :  { %1913 = vsyncpa [#allocation5 + $0x1], 1 }

</bundles_post_ra>
